<compile_context>
chip_gen: v7x
topology: tpu7x:2x2x1
jax: 0.10.0
libtpu: 0.0.40
codegen_flags: <defaults>
</compile_context>

<pallas_src>
import functools

import jax
import jax.numpy as jnp
from jax import lax
from jax.experimental import pallas as pl
from jax.experimental.pallas import tpu as pltpu

LANE = 128      # f32 lane width
SUBLANE = 8     # f32 sublane width

_GATES = {"rnn": 1, "gru": 3, "lstm": 4}

# Whether this Pallas build accepts pl.Buffered(1) for the resident weights.
# Resolved lazily on the first kernel launch (None = unknown).
_WEIGHT_SINGLE_BUFFERING = None


# ---------------------------------------------------------------------------
# helpers
# ---------------------------------------------------------------------------
def _round_up(x, m):
    return ((x + m - 1) // m) * m


def _sigmoid(x):
    # sigmoid(x) = 0.5*(1 + tanh(x/2)): tanh runs on the EUP slot (idle next to
    # the MXU matmul) and avoids a VPU divide.  Shared by kernels & references.
    return 0.5 * (jnp.tanh(0.5 * x) + 1.0)


def _tpu_info():
    try:
        return pltpu.get_tpu_info()
    except Exception:
        return None


def _vmem_capacity_bytes():
    info = _tpu_info()
    cap = getattr(info, "vmem_capacity_bytes", None) if info is not None else None
    try:
        cap = int(cap) if cap else 0
    except Exception:
        cap = 0
    # Conservative fallback: v7x has 64 MiB per TensorCore (v5e/v6e have 128).
    return cap if cap > 0 else (64 << 20)


def _tensorcores_per_chip():
    # v5e / v6e expose a single TensorCore per chip; only v7x-class chips have
    # two that a "parallel" grid axis can be sharded over.  Best-effort
    # detection; default to the safe single-core answer.
    try:
        kind = jax.devices()[0].device_kind.lower()
    except Exception:
        return 1
    return 2 if "7" in kind else 1


# ---------------------------------------------------------------------------
# Recurrence kernels.  grid = (batch_blocks, time_blocks); each grid step
# processes TT timesteps with an unrolled fori_loop.  gx_t (input projection,
# bias already folded in) is precomputed outside; the loop body only contains
# the recurrent matmul h @ Wh and the gate math.  State is carried in VMEM
# scratch across the (arbitrary) time axis.
# ---------------------------------------------------------------------------
def _rnn_rec_kernel(gx_ref, h0_ref, wh_ref, hseq_ref, h_sc):
    tt = gx_ref.shape[0]
    cd = wh_ref.dtype

    @pl.when(pl.program_id(1) == 0)
    def _():
        h_sc[...] = h0_ref[...]

    def step(t, h):
        h_new = jnp.tanh(gx_ref[t]
                         + jnp.dot(h.astype(cd), wh_ref[...],
                                   preferred_element_type=jnp.float32))
        hseq_ref[t] = h_new
        return h_new

    h_sc[...] = lax.fori_loop(0, tt, step, h_sc[...], unroll=True)


def _gru_rec_kernel(gx_ref, h0_ref, wh_ref, bh_ref, hseq_ref, h_sc, *, hidden):
    Hp = hidden
    tt = gx_ref.shape[0]
    cd = wh_ref.dtype
    bh = bh_ref[...]          # hoisted load; bh cannot be folded into gx (n-gate)

    @pl.when(pl.program_id(1) == 0)
    def _():
        h_sc[...] = h0_ref[...]

    def step(t, h):
        gx = gx_ref[t]
        gh = (jnp.dot(h.astype(cd), wh_ref[...],
                      preferred_element_type=jnp.float32) + bh)
        z = _sigmoid(gx[:, 0 * Hp:1 * Hp] + gh[:, 0 * Hp:1 * Hp])
        r = _sigmoid(gx[:, 1 * Hp:2 * Hp] + gh[:, 1 * Hp:2 * Hp])
        n = jnp.tanh(gx[:, 2 * Hp:3 * Hp] + r * gh[:, 2 * Hp:3 * Hp])
        h_new = (1.0 - z) * n + z * h
        hseq_ref[t] = h_new
        return h_new

    h_sc[...] = lax.fori_loop(0, tt, step, h_sc[...], unroll=True)


def _lstm_rec_kernel(gx_ref, h0_ref, c0_ref, wh_ref, hseq_ref, cT_ref,
                     h_sc, c_sc, c_blk_sc, *, hidden, last_block, last_local):
    Hp = hidden
    tt = gx_ref.shape[0]
    cd = wh_ref.dtype

    @pl.when(pl.program_id(1) == 0)
    def _():
        h_sc[...] = h0_ref[...]
        c_sc[...] = c0_ref[...]

    def step(t, carry):
        h, c = carry
        g = gx_ref[t] + jnp.dot(h.astype(cd), wh_ref[...],
                                preferred_element_type=jnp.float32)
        i = _sigmoid(g[:, 0 * Hp:1 * Hp])
        f = _sigmoid(g[:, 1 * Hp:2 * Hp])
        gg = jnp.tanh(g[:, 2 * Hp:3 * Hp])
        o = _sigmoid(g[:, 3 * Hp:4 * Hp])
        c_new = f * c + i * gg
        h_new = o * jnp.tanh(c_new)
        hseq_ref[t] = h_new
        c_blk_sc[t] = c_new
        return (h_new, c_new)

    h, c = lax.fori_loop(0, tt, step, (h_sc[...], c_sc[...]), unroll=True)
    h_sc[...] = h
    c_sc[...] = c

    # The time axis is padded to a multiple of TT: padded steps keep evolving
    # the state but must not leak into the returned cell state, so capture it
    # at the last *real* timestep (static indices).
    @pl.when(pl.program_id(1) == last_block)
    def _():
        cT_ref[...] = c_blk_sc[last_local]


# ---------------------------------------------------------------------------
# One fused forward over a sequence: XLA input projection (M = T*B) ->
# Pallas time-blocked recurrence -> XLA output projection (M = T*B).
# ---------------------------------------------------------------------------
@functools.partial(
    jax.jit,
    static_argnames=("celltype", "dims", "time_block", "num_batch_blocks",
                     "single_buffer_weights", "vmem_limit"))
def _forward_sequence_impl(padded, x_seq, state, *, celltype, dims, time_block,
                           num_batch_blocks, single_buffer_weights, vmem_limit):
    D, H, O, Dp, Hp, Op = dims
    T, B, _ = x_seq.shape
    pdt = padded["wh"].dtype
    G = _GATES[celltype]
    GHp = G * Hp

    TT = time_block
    Tp = _round_up(T, TT)
    TB = Tp // TT
    NB = num_batch_blocks
    Bp = _round_up(max(B, 1), SUBLANE)
    BB = Bp // NB
    last_block, last_local = (T - 1) // TT, (T - 1) % TT

    # ---- hoisted, batched input projection (one MXU matmul, M = T*B) -------
    x_pad = jnp.zeros((Tp, Bp, Dp), pdt).at[:T, :B, :D].set(x_seq.astype(pdt))
    in_bias = padded["b"] if celltype in ("rnn", "lstm") else padded["bx"]
    gx_seq = (jnp.einsum("tbd,dg->tbg", x_pad, padded["wx"],
                         preferred_element_type=jnp.float32) + in_bias)

    # ---- padded initial state ----------------------------------------------
    if celltype == "lstm":
        h0, c0 = state
    else:
        h0, c0 = state, None
    h0_pad = jnp.zeros((Bp, Hp), jnp.float32).at[:B, :H].set(
        h0.astype(jnp.float32))

    # ---- BlockSpecs ---------------------------------------------------------
    gx_spec = pl.BlockSpec((TT, BB, GHp), lambda b, tb: (tb, b, 0))
    st_spec = pl.BlockSpec((BB, Hp), lambda b, tb: (b, 0))
    hseq_spec = pl.BlockSpec((TT, BB, Hp), lambda b, tb: (tb, b, 0))

    def w_spec(shape):
        # Constant block index -> weight stays resident in VMEM for the whole
        # sequence; optionally single-buffered (no need for a second copy).
        if single_buffer_weights:
            return pl.BlockSpec(shape, lambda b, tb: (0, 0),
                                pipeline_mode=pl.Buffered(1))
        return pl.BlockSpec(shape, lambda b, tb: (0, 0))

    if celltype == "rnn":
        kern = _rnn_rec_kernel
        inputs = [gx_seq, h0_pad, padded["wh"]]
        in_specs = [gx_spec, st_spec, w_spec(padded["wh"].shape)]
        out_shape = jax.ShapeDtypeStruct((Tp, Bp, Hp), jnp.float32)
        out_specs = hseq_spec
        scratch = [pltpu.VMEM((BB, Hp), jnp.float32)]
    elif celltype == "gru":
        kern = functools.partial(_gru_rec_kernel, hidden=Hp)
        inputs = [gx_seq, h0_pad, padded["wh"], padded["bh"]]
        in_specs = [gx_spec, st_spec, w_spec(padded["wh"].shape),
                    w_spec(padded["bh"].shape)]
        out_shape = jax.ShapeDtypeStruct((Tp, Bp, Hp), jnp.float32)
        out_specs = hseq_spec
        scratch = [pltpu.VMEM((BB, Hp), jnp.float32)]
    else:  # lstm
        c0_pad = jnp.zeros((Bp, Hp), jnp.float32).at[:B, :H].set(
            c0.astype(jnp.float32))
        kern = functools.partial(_lstm_rec_kernel, hidden=Hp,
                                 last_block=last_block, last_local=last_local)
        inputs = [gx_seq, h0_pad, c0_pad, padded["wh"]]
        in_specs = [gx_spec, st_spec, st_spec, w_spec(padded["wh"].shape)]
        out_shape = (jax.ShapeDtypeStruct((Tp, Bp, Hp), jnp.float32),
                     jax.ShapeDtypeStruct((Bp, Hp), jnp.float32))
        out_specs = (hseq_spec, st_spec)
        scratch = [pltpu.VMEM((BB, Hp), jnp.float32),
                   pltpu.VMEM((BB, Hp), jnp.float32),
                   pltpu.VMEM((TT, BB, Hp), jnp.float32)]

    outs = pl.pallas_call(
        kern,
        grid=(NB, TB),
        in_specs=in_specs,
        out_specs=out_specs,
        out_shape=out_shape,
        scratch_shapes=scratch,
        compiler_params=pltpu.CompilerParams(
            dimension_semantics=("parallel", "arbitrary"),
            vmem_limit_bytes=vmem_limit),
    )(*inputs)

    if celltype == "lstm":
        h_seq, cT_pad = outs
    else:
        h_seq = outs

    # ---- deferred output projection (one MXU matmul, M = T*B) --------------
    cd = padded["why"].dtype
    y = (jnp.einsum("tbh,ho->tbo", h_seq.astype(cd), padded["why"],
                    preferred_element_type=jnp.float32) + padded["by"])
    y = y[:T, :B, :O]

    hT = h_seq[T - 1, :B, :H]
    if celltype == "lstm":
        new_state = (hT, cT_pad[:B, :H])
    else:
        new_state = hT
    return y, new_state


# ---------------------------------------------------------------------------
# Pure-JAX single-step references (unpadded f32 params) for correctness checks
# ---------------------------------------------------------------------------
def rnn_ref(p, x, h):
    h_new = jnp.tanh(x @ p["wxh"] + h @ p["whh"] + p["bh"])
    return h_new @ p["why"] + p["by"], h_new


def gru_ref(p, x, h):
    H = h.shape[1]
    gx = x @ p["wx"] + p["bx"]
    gh = h @ p["wh"] + p["bh"]
    z = _sigmoid(gx[:, :H] + gh[:, :H])
    r = _sigmoid(gx[:, H:2 * H] + gh[:, H:2 * H])
    n = jnp.tanh(gx[:, 2 * H:] + r * gh[:, 2 * H:])
    h_new = (1.0 - z) * n + z * h
    return h_new @ p["why"] + p["by"], h_new


def lstm_ref(p, x, h, c):
    H = h.shape[1]
    g = x @ p["wx"] + h @ p["wh"] + p["b"]
    i = _sigmoid(g[:, :H])
    f = _sigmoid(g[:, H:2 * H])
    gg = jnp.tanh(g[:, 2 * H:3 * H])
    o = _sigmoid(g[:, 3 * H:])
    c_new = f * c + i * gg
    h_new = o * jnp.tanh(c_new)
    return h_new @ p["why"] + p["by"], (h_new, c_new)


# ---------------------------------------------------------------------------
# RecurrentNetwork: mirrors the PyTorch module's forward() semantics.
# ---------------------------------------------------------------------------
class RecurrentNetwork:
    def __init__(self, celltype, in_dim, hidden_dim, out_dim, layers=1, seed=0,
                 param_dtype=jnp.bfloat16, time_block=16):
        celltype = celltype.lower()
        if celltype not in ("rnn", "gru", "lstm"):
            raise ValueError("Celltype {} not recognized".format(celltype))
        # `layers` is accepted for API parity with the torch module (which also
        # never uses it: its cells are single-layer).
        self.celltype = celltype
        self.in_dim, self.hidden_dim, self.out_dim = in_dim, hidden_dim, out_dim
        self.param_dtype = jnp.dtype(param_dtype)
        self.time_block = int(time_block)

        D, H, O = in_dim, hidden_dim, out_dim
        Dp, Hp, Op = _round_up(D, LANE), _round_up(H, LANE), _round_up(O, LANE)
        self._Dp, self._Hp, self._Op = Dp, Hp, Op

        key = jax.random.PRNGKey(seed)
        ks = jax.random.split(key, 8)

        def init(k, shape, scale=0.1):
            return (scale * jax.random.normal(k, shape)).astype(jnp.float32)

        pdt = self.param_dtype
        if celltype == "rnn":
            p = dict(wxh=init(ks[0], (D, H)), whh=init(ks[1], (H, H)),
                     bh=init(ks[2], (1, H)),
                     why=init(ks[3], (H, O)), by=init(ks[4], (1, O)))
            wx = jnp.zeros((Dp, Hp), jnp.float32).at[:D, :H].set(p["wxh"])
            wh = jnp.zeros((Hp, Hp), jnp.float32).at[:H, :H].set(p["whh"])
            b = jnp.zeros((1, Hp), jnp.float32).at[:, :H].set(p["bh"])
            padded = dict(wx=wx.astype(pdt), wh=wh.astype(pdt), b=b)
        elif celltype == "gru":
            p = dict(wx=init(ks[0], (D, 3 * H)), wh=init(ks[1], (H, 3 * H)),
                     bx=init(ks[2], (1, 3 * H)), bh=init(ks[3], (1, 3 * H)),
                     why=init(ks[4], (H, O)), by=init(ks[5], (1, O)))
            wx = jnp.zeros((Dp, 3 * Hp), jnp.float32)
            wh = jnp.zeros((Hp, 3 * Hp), jnp.float32)
            bx = jnp.zeros((1, 3 * Hp), jnp.float32)
            bh = jnp.zeros((1, 3 * Hp), jnp.float32)
            for g in range(3):       # gate packing [z | r | n], each Hp wide
                sp = slice(g * Hp, g * Hp + H)
                su = slice(g * H, (g + 1) * H)
                wx = wx.at[:D, sp].set(p["wx"][:, su])
                wh = wh.at[:H, sp].set(p["wh"][:, su])
                bx = bx.at[:, sp].set(p["bx"][:, su])
                bh = bh.at[:, sp].set(p["bh"][:, su])
            padded = dict(wx=wx.astype(pdt), wh=wh.astype(pdt), bx=bx, bh=bh)
        else:  # lstm
            p = dict(wx=init(ks[0], (D, 4 * H)), wh=init(ks[1], (H, 4 * H)),
                     b=init(ks[2], (1, 4 * H)),
                     why=init(ks[3], (H, O)), by=init(ks[4], (1, O)))
            wx = jnp.zeros((Dp, 4 * Hp), jnp.float32)
            wh = jnp.zeros((Hp, 4 * Hp), jnp.float32)
            b = jnp.zeros((1, 4 * Hp), jnp.float32)
            for g in range(4):       # gate packing [i | f | g | o], each Hp wide
                sp = slice(g * Hp, g * Hp + H)
                su = slice(g * H, (g + 1) * H)
                wx = wx.at[:D, sp].set(p["wx"][:, su])
                wh = wh.at[:H, sp].set(p["wh"][:, su])
                b = b.at[:, sp].set(p["b"][:, su])
            padded = dict(wx=wx.astype(pdt), wh=wh.astype(pdt), b=b)

        padded["why"] = jnp.zeros((Hp, Op), jnp.float32).at[:H, :O].set(
            p["why"]).astype(pdt)
        padded["by"] = jnp.zeros((1, Op), jnp.float32).at[:, :O].set(p["by"])

        self.params = p         # unpadded f32 params (used by the references)
        self.padded = padded    # lane/sublane-padded params fed to the kernel
        self.state = None

    # -- state handling -------------------------------------------------------
    def init_state(self, batch):
        h = jnp.zeros((batch, self.hidden_dim), jnp.float32)
        if self.celltype == "lstm":
            self.state = (h, jnp.zeros((batch, self.hidden_dim), jnp.float32))
        else:
            self.state = h
        return self.state

    # -- VMEM budget for the recurrence kernel --------------------------------
    def _vmem_limit(self, TT, BB):
        G = _GATES[self.celltype]
        Hp = self._Hp
        wb = jnp.dtype(self.param_dtype).itemsize
        est = 0
        est += 2 * TT * BB * G * Hp * 4                  # gx blocks (x2 buffered)
        est += 2 * TT * BB * Hp * 4                      # h_seq blocks
        est += 4 * 2 * BB * Hp * 4                       # h0/c0 in, cT out blocks
        est += 2 * (Hp * G * Hp * wb + G * Hp * 4)       # resident weights (+bias)
        est += (2 + TT) * BB * Hp * 4                    # h/c/c_blk scratch
        est += 4 << 20                                   # compiler slack
        cap = _vmem_capacity_bytes()
        return int(max(16 << 20, min(max(est, 32 << 20), cap - (8 << 20))))

    # -- fused-sequence runner -------------------------------------------------
    def _run_sequence(self, x_seq, state):
        global _WEIGHT_SINGLE_BUFFERING
        T, B, D = x_seq.shape
        assert D == self.in_dim
        TT = max(1, min(self.time_block, T))
        Bp = _round_up(max(B, 1), SUBLANE)
        # Split the batch across TensorCores only on chips that actually have
        # two (v7x-class); on v5e/v6e a split just doubles the serial grid.
        NB = 1
        if (_tensorcores_per_chip() >= 2 and Bp >= 2 * SUBLANE
                and Bp % (2 * SUBLANE) == 0):
            NB = 2
        dims = (self.in_dim, self.hidden_dim, self.out_dim,
                self._Dp, self._Hp, self._Op)
        common = dict(celltype=self.celltype, dims=dims, time_block=TT,
                      num_batch_blocks=NB,
                      vmem_limit=self._vmem_limit(TT, Bp // NB))

        if _WEIGHT_SINGLE_BUFFERING is None:
            try:
                out = _forward_sequence_impl(self.padded, x_seq, state,
                                             single_buffer_weights=True,
                                             **common)
                jax.block_until_ready(out)
                _WEIGHT_SINGLE_BUFFERING = True
                return out
            except Exception:
                _WEIGHT_SINGLE_BUFFERING = False
        return _forward_sequence_impl(
            self.padded, x_seq, state,
            single_buffer_weights=_WEIGHT_SINGLE_BUFFERING, **common)

    # -- public API -------------------------------------------------------------
    def forward(self, x):
        """Single step, torch-module semantics: x is (B, D) -> (y, new_state).

        NOTE: every per-step call re-streams the weights HBM->VMEM; prefer
        forward_sequence() for whole sequences.
        """
        # TODO(synk): keep weights resident across per-step calls via a
        # cross-pallas_call semaphore/VMEM-ref future for streaming decode.
        if self.state is None:
            self.init_state(x.shape[0])
        y_seq, new_state = self._run_sequence(x[None], self.state)
        self.state = new_state          # == `self.cell.a = new_state`
        return y_seq[0], new_state

    def forward_sequence(self, x_seq):
        """Whole sequence (T, B, D): one fused Pallas recurrence kernel."""
        if self.state is None:
            self.init_state(x_seq.shape[1])
        y_seq, new_state = self._run_sequence(x_seq, self.state)
        self.state = new_state
        return y_seq, new_state

    def forward_ref(self, x, state):
        if self.celltype == "rnn":
            return rnn_ref(self.params, x, state)
        if self.celltype == "gru":
            return gru_ref(self.params, x, state)
        return lstm_ref(self.params, x, state[0], state[1])

    # TODO(synk): fit() (MSELoss + Adam training loop) is a training utility,
    # not part of the forward pass -> not translated to Pallas.


# ---------------------------------------------------------------------------
if __name__ == "__main__":
    T, B, D, H, O = 8, 2, 16, 32, 8
    key = jax.random.PRNGKey(0)
    x_seq = jax.random.normal(key, (T, B, D), dtype=jnp.float32)

    def run_reference(net, xs):
        b = xs.shape[1]
        h0 = jnp.zeros((b, net.hidden_dim), jnp.float32)
        st = (h0, jnp.zeros_like(h0)) if net.celltype == "lstm" else h0
        ys = []
        for t in range(xs.shape[0]):
            y_t, st = net.forward_ref(xs[t], st)
            ys.append(y_t)
        return jnp.stack(ys, axis=0), st

    for celltype in ("rnn", "gru", "lstm"):
        # float32 weights -> tight tolerances against the step-by-step reference
        net = RecurrentNetwork(celltype, in_dim=D, hidden_dim=H, out_dim=O,
                               seed=0, param_dtype=jnp.float32)

        net.init_state(B)
        y_seq, final_state = net.forward_sequence(x_seq)
        jax.block_until_ready(y_seq)

        y_ref, state_ref = run_reference(net, x_seq)
        assert y_seq.shape == (T, B, O)
        assert jnp.allclose(y_seq, y_ref, atol=5e-4, rtol=5e-4), \
            f"{celltype}: sequence output mismatch"
        for a, b_ in zip(jax.tree_util.tree_leaves(final_state),
                         jax.tree_util.tree_leaves(state_ref)):
            assert jnp.allclose(a, b_, atol=5e-4, rtol=5e-4), \
                f"{celltype}: final state mismatch"

        # single-step forward() (updates stored state, like the torch module)
        net.init_state(B)
        y1, s1 = net.forward(x_seq[0])
        jax.block_until_ready(y1)
        h0 = jnp.zeros((B, H), jnp.float32)
        st0 = (h0, jnp.zeros_like(h0)) if celltype == "lstm" else h0
        y1_ref, s1_ref = net.forward_ref(x_seq[0], st0)
        assert jnp.allclose(y1, y1_ref, atol=5e-4, rtol=5e-4), \
            f"{celltype}: single-step output mismatch"
        for a, b_ in zip(jax.tree_util.tree_leaves(s1),
                         jax.tree_util.tree_leaves(s1_ref)):
            assert jnp.allclose(a, b_, atol=5e-4, rtol=5e-4), \
                f"{celltype}: single-step state mismatch"

    # default bfloat16 weight path (MXU-native), loose-tolerance sanity check
    net_bf16 = RecurrentNetwork("gru", in_dim=D, hidden_dim=H, out_dim=O, seed=0)
    net_bf16.init_state(B)
    y_bf16, _ = net_bf16.forward_sequence(x_seq)
    jax.block_until_ready(y_bf16)
    y_ref_bf16, _ = run_reference(net_bf16, x_seq)
    assert jnp.allclose(y_bf16, y_ref_bf16, atol=3e-2, rtol=3e-2), \
        "gru (bf16 weights): output mismatch beyond bf16 tolerance"

    print("KERNEL_OK")
</pallas_src>

<mosaic_0001>
module attributes {stable_mosaic.version = 11 : i64} {
  func.func @_rnn_rec_kernel(%arg0: i32, %arg1: i32, %arg2: memref<8x8x128xf32, #tpu.memory_space<vmem>>, %arg3: memref<8x128xf32, #tpu.memory_space<vmem>>, %arg4: memref<128x128xf32, #tpu.memory_space<vmem>>, %arg5: memref<8x8x128xf32, #tpu.memory_space<vmem>>, %arg6: memref<8x128xf32, #tpu.memory_space<vmem>>) attributes {dimension_semantics = [#tpu.dimension_semantics<parallel>, #tpu.dimension_semantics<arbitrary>], iteration_bounds = array<i64: 1, 1>, scalar_prefetch = 0 : i64, scratch_operands = 1 : i64, tpu.core_type = #tpu.core_type<tc>, window_params = [{transform_indices = @transform_0, window_bounds = array<i64: 8, 8, 128>}, {transform_indices = @transform_1, window_bounds = array<i64: 8, 128>}, {pipeline_mode = #tpu.pipeline_mode<synchronous>, transform_indices = @transform_2, window_bounds = array<i64: 128, 128>}, {transform_indices = @transform_3, window_bounds = array<i64: 8, 8, 128>}]} {
    %c0_i32 = arith.constant 0 : i32
    %0 = arith.cmpi eq, %arg1, %c0_i32 : i32
    %1 = arith.extui %0 : i1 to i32
    %c0_i32_0 = arith.constant 0 : i32
    %2 = arith.cmpi ne, %1, %c0_i32_0 : i32
    scf.if %2 {
      %c0_60 = arith.constant 0 : index
      %c0_61 = arith.constant 0 : index
      %93 = vector.load %arg3[%c0_60, %c0_61] : memref<8x128xf32, #tpu.memory_space<vmem>>, vector<8x128xf32>
      %c0_62 = arith.constant 0 : index
      %c0_63 = arith.constant 0 : index
      %94 = vector.load %arg6[%c0_62, %c0_63] : memref<8x128xf32, #tpu.memory_space<vmem>>, vector<8x128xf32>
      tpu.vector_store %arg6[%c0_62, %c0_63], %93 {strides = array<i32>} : memref<8x128xf32, #tpu.memory_space<vmem>>, vector<8x128xf32>,
    } else {
    }
    %c0 = arith.constant 0 : index
    %c0_1 = arith.constant 0 : index
    %3 = vector.load %arg6[%c0, %c0_1] : memref<8x128xf32, #tpu.memory_space<vmem>>, vector<8x128xf32>
    %c0_i32_2 = arith.constant 0 : i32
    %4 = arith.index_cast %c0_i32_2 : i32 to index
    %c0_3 = arith.constant 0 : index
    %c0_4 = arith.constant 0 : index
    %5 = vector.load %arg2[%4, %c0_3, %c0_4] : memref<8x8x128xf32, #tpu.memory_space<vmem>>, vector<1x8x128xf32>
    %6 = vector.shape_cast %5 : vector<1x8x128xf32> to vector<8x128xf32>
    %c0_5 = arith.constant 0 : index
    %c0_6 = arith.constant 0 : index
    %7 = vector.load %arg4[%c0_5, %c0_6] : memref<128x128xf32, #tpu.memory_space<vmem>>, vector<128x128xf32>
    %cst = arith.constant dense<0.000000e+00> : vector<8x128xf32>
    %8 = tpu.matmul %3, %7, %cst {dimension_numbers = #tpu.dot_dimension_numbers<[1], [0], [0], [1], [0, 0, 1, 1], [], []>} : vector<8x128xf32>, vector<128x128xf32>, vector<8x128xf32> -> vector<8x128xf32>
    %9 = arith.addf %6, %8 : vector<8x128xf32>
    %10 = math.tanh %9 : vector<8x128xf32>
    %11 = arith.index_cast %c0_i32_2 : i32 to index
    %c0_7 = arith.constant 0 : index
    %c0_8 = arith.constant 0 : index
    %12 = vector.load %arg5[%11, %c0_7, %c0_8] : memref<8x8x128xf32, #tpu.memory_space<vmem>>, vector<1x8x128xf32>
    %13 = vector.shape_cast %12 : vector<1x8x128xf32> to vector<8x128xf32>
    %14 = vector.shape_cast %10 : vector<8x128xf32> to vector<1x8x128xf32>
    tpu.vector_store %arg5[%11, %c0_7, %c0_8], %14 {strides = array<i32>} : memref<8x8x128xf32, #tpu.memory_space<vmem>>, vector<1x8x128xf32>,
    %c1_i32 = arith.constant 1 : i32
    %15 = arith.index_cast %c1_i32 : i32 to index
    %c0_9 = arith.constant 0 : index
    %c0_10 = arith.constant 0 : index
    %16 = vector.load %arg2[%15, %c0_9, %c0_10] : memref<8x8x128xf32, #tpu.memory_space<vmem>>, vector<1x8x128xf32>
    %17 = vector.shape_cast %16 : vector<1x8x128xf32> to vector<8x128xf32>
    %c0_11 = arith.constant 0 : index
    %c0_12 = arith.constant 0 : index
    %18 = vector.load %arg4[%c0_11, %c0_12] : memref<128x128xf32, #tpu.memory_space<vmem>>, vector<128x128xf32>
    %cst_13 = arith.constant dense<0.000000e+00> : vector<8x128xf32>
    %19 = tpu.matmul %10, %18, %cst_13 {dimension_numbers = #tpu.dot_dimension_numbers<[1], [0], [0], [1], [0, 0, 1, 1], [], []>} : vector<8x128xf32>, vector<128x128xf32>, vector<8x128xf32> -> vector<8x128xf32>
    %20 = arith.addf %17, %19 : vector<8x128xf32>
    %21 = math.tanh %20 : vector<8x128xf32>
    %22 = arith.index_cast %c1_i32 : i32 to index
    %c0_14 = arith.constant 0 : index
    %c0_15 = arith.constant 0 : index
    %23 = vector.load %arg5[%22, %c0_14, %c0_15] : memref<8x8x128xf32, #tpu.memory_space<vmem>>, vector<1x8x128xf32>
    %24 = vector.shape_cast %23 : vector<1x8x128xf32> to vector<8x128xf32>
    %25 = vector.shape_cast %21 : vector<8x128xf32> to vector<1x8x128xf32>
    tpu.vector_store %arg5[%22, %c0_14, %c0_15], %25 {strides = array<i32>} : memref<8x8x128xf32, #tpu.memory_space<vmem>>, vector<1x8x128xf32>,
    %c2_i32 = arith.constant 2 : i32
    %26 = arith.index_cast %c2_i32 : i32 to index
    %c0_16 = arith.constant 0 : index
    %c0_17 = arith.constant 0 : index
    %27 = vector.load %arg2[%26, %c0_16, %c0_17] : memref<8x8x128xf32, #tpu.memory_space<vmem>>, vector<1x8x128xf32>
    %28 = vector.shape_cast %27 : vector<1x8x128xf32> to vector<8x128xf32>
    %c0_18 = arith.constant 0 : index
    %c0_19 = arith.constant 0 : index
    %29 = vector.load %arg4[%c0_18, %c0_19] : memref<128x128xf32, #tpu.memory_space<vmem>>, vector<128x128xf32>
    %cst_20 = arith.constant dense<0.000000e+00> : vector<8x128xf32>
    %30 = tpu.matmul %21, %29, %cst_20 {dimension_numbers = #tpu.dot_dimension_numbers<[1], [0], [0], [1], [0, 0, 1, 1], [], []>} : vector<8x128xf32>, vector<128x128xf32>, vector<8x128xf32> -> vector<8x128xf32>
    %31 = arith.addf %28, %30 : vector<8x128xf32>
    %32 = math.tanh %31 : vector<8x128xf32>
    %33 = arith.index_cast %c2_i32 : i32 to index
    %c0_21 = arith.constant 0 : index
    %c0_22 = arith.constant 0 : index
    %34 = vector.load %arg5[%33, %c0_21, %c0_22] : memref<8x8x128xf32, #tpu.memory_space<vmem>>, vector<1x8x128xf32>
    %35 = vector.shape_cast %34 : vector<1x8x128xf32> to vector<8x128xf32>
    %36 = vector.shape_cast %32 : vector<8x128xf32> to vector<1x8x128xf32>
    tpu.vector_store %arg5[%33, %c0_21, %c0_22], %36 {strides = array<i32>} : memref<8x8x128xf32, #tpu.memory_space<vmem>>, vector<1x8x128xf32>,
    %c3_i32 = arith.constant 3 : i32
    %37 = arith.index_cast %c3_i32 : i32 to index
    %c0_23 = arith.constant 0 : index
    %c0_24 = arith.constant 0 : index
    %38 = vector.load %arg2[%37, %c0_23, %c0_24] : memref<8x8x128xf32, #tpu.memory_space<vmem>>, vector<1x8x128xf32>
    %39 = vector.shape_cast %38 : vector<1x8x128xf32> to vector<8x128xf32>
    %c0_25 = arith.constant 0 : index
    %c0_26 = arith.constant 0 : index
    %40 = vector.load %arg4[%c0_25, %c0_26] : memref<128x128xf32, #tpu.memory_space<vmem>>, vector<128x128xf32>
    %cst_27 = arith.constant dense<0.000000e+00> : vector<8x128xf32>
    %41 = tpu.matmul %32, %40, %cst_27 {dimension_numbers = #tpu.dot_dimension_numbers<[1], [0], [0], [1], [0, 0, 1, 1], [], []>} : vector<8x128xf32>, vector<128x128xf32>, vector<8x128xf32> -> vector<8x128xf32>
    %42 = arith.addf %39, %41 : vector<8x128xf32>
    %43 = math.tanh %42 : vector<8x128xf32>
    %44 = arith.index_cast %c3_i32 : i32 to index
    %c0_28 = arith.constant 0 : index
    %c0_29 = arith.constant 0 : index
    %45 = vector.load %arg5[%44, %c0_28, %c0_29] : memref<8x8x128xf32, #tpu.memory_space<vmem>>, vector<1x8x128xf32>
    %46 = vector.shape_cast %45 : vector<1x8x128xf32> to vector<8x128xf32>
    %47 = vector.shape_cast %43 : vector<8x128xf32> to vector<1x8x128xf32>
    tpu.vector_store %arg5[%44, %c0_28, %c0_29], %47 {strides = array<i32>} : memref<8x8x128xf32, #tpu.memory_space<vmem>>, vector<1x8x128xf32>,
    %c4_i32 = arith.constant 4 : i32
    %48 = arith.index_cast %c4_i32 : i32 to index
    %c0_30 = arith.constant 0 : index
    %c0_31 = arith.constant 0 : index
    %49 = vector.load %arg2[%48, %c0_30, %c0_31] : memref<8x8x128xf32, #tpu.memory_space<vmem>>, vector<1x8x128xf32>
    %50 = vector.shape_cast %49 : vector<1x8x128xf32> to vector<8x128xf32>
    %c0_32 = arith.constant 0 : index
    %c0_33 = arith.constant 0 : index
    %51 = vector.load %arg4[%c0_32, %c0_33] : memref<128x128xf32, #tpu.memory_space<vmem>>, vector<128x128xf32>
    %cst_34 = arith.constant dense<0.000000e+00> : vector<8x128xf32>
    %52 = tpu.matmul %43, %51, %cst_34 {dimension_numbers = #tpu.dot_dimension_numbers<[1], [0], [0], [1], [0, 0, 1, 1], [], []>} : vector<8x128xf32>, vector<128x128xf32>, vector<8x128xf32> -> vector<8x128xf32>
    %53 = arith.addf %50, %52 : vector<8x128xf32>
    %54 = math.tanh %53 : vector<8x128xf32>
    %55 = arith.index_cast %c4_i32 : i32 to index
    %c0_35 = arith.constant 0 : index
    %c0_36 = arith.constant 0 : index
    %56 = vector.load %arg5[%55, %c0_35, %c0_36] : memref<8x8x128xf32, #tpu.memory_space<vmem>>, vector<1x8x128xf32>
    %57 = vector.shape_cast %56 : vector<1x8x128xf32> to vector<8x128xf32>
    %58 = vector.shape_cast %54 : vector<8x128xf32> to vector<1x8x128xf32>
    tpu.vector_store %arg5[%55, %c0_35, %c0_36], %58 {strides = array<i32>} : memref<8x8x128xf32, #tpu.memory_space<vmem>>, vector<1x8x128xf32>,
    %c5_i32 = arith.constant 5 : i32
    %59 = arith.index_cast %c5_i32 : i32 to index
    %c0_37 = arith.constant 0 : index
    %c0_38 = arith.constant 0 : index
    %60 = vector.load %arg2[%59, %c0_37, %c0_38] : memref<8x8x128xf32, #tpu.memory_space<vmem>>, vector<1x8x128xf32>
    %61 = vector.shape_cast %60 : vector<1x8x128xf32> to vector<8x128xf32>
    %c0_39 = arith.constant 0 : index
    %c0_40 = arith.constant 0 : index
    %62 = vector.load %arg4[%c0_39, %c0_40] : memref<128x128xf32, #tpu.memory_space<vmem>>, vector<128x128xf32>
    %cst_41 = arith.constant dense<0.000000e+00> : vector<8x128xf32>
    %63 = tpu.matmul %54, %62, %cst_41 {dimension_numbers = #tpu.dot_dimension_numbers<[1], [0], [0], [1], [0, 0, 1, 1], [], []>} : vector<8x128xf32>, vector<128x128xf32>, vector<8x128xf32> -> vector<8x128xf32>
    %64 = arith.addf %61, %63 : vector<8x128xf32>
    %65 = math.tanh %64 : vector<8x128xf32>
    %66 = arith.index_cast %c5_i32 : i32 to index
    %c0_42 = arith.constant 0 : index
    %c0_43 = arith.constant 0 : index
    %67 = vector.load %arg5[%66, %c0_42, %c0_43] : memref<8x8x128xf32, #tpu.memory_space<vmem>>, vector<1x8x128xf32>
    %68 = vector.shape_cast %67 : vector<1x8x128xf32> to vector<8x128xf32>
    %69 = vector.shape_cast %65 : vector<8x128xf32> to vector<1x8x128xf32>
    tpu.vector_store %arg5[%66, %c0_42, %c0_43], %69 {strides = array<i32>} : memref<8x8x128xf32, #tpu.memory_space<vmem>>, vector<1x8x128xf32>,
    %c6_i32 = arith.constant 6 : i32
    %70 = arith.index_cast %c6_i32 : i32 to index
    %c0_44 = arith.constant 0 : index
    %c0_45 = arith.constant 0 : index
    %71 = vector.load %arg2[%70, %c0_44, %c0_45] : memref<8x8x128xf32, #tpu.memory_space<vmem>>, vector<1x8x128xf32>
    %72 = vector.shape_cast %71 : vector<1x8x128xf32> to vector<8x128xf32>
    %c0_46 = arith.constant 0 : index
    %c0_47 = arith.constant 0 : index
    %73 = vector.load %arg4[%c0_46, %c0_47] : memref<128x128xf32, #tpu.memory_space<vmem>>, vector<128x128xf32>
    %cst_48 = arith.constant dense<0.000000e+00> : vector<8x128xf32>
    %74 = tpu.matmul %65, %73, %cst_48 {dimension_numbers = #tpu.dot_dimension_numbers<[1], [0], [0], [1], [0, 0, 1, 1], [], []>} : vector<8x128xf32>, vector<128x128xf32>, vector<8x128xf32> -> vector<8x128xf32>
    %75 = arith.addf %72, %74 : vector<8x128xf32>
    %76 = math.tanh %75 : vector<8x128xf32>
    %77 = arith.index_cast %c6_i32 : i32 to index
    %c0_49 = arith.constant 0 : index
    %c0_50 = arith.constant 0 : index
    %78 = vector.load %arg5[%77, %c0_49, %c0_50] : memref<8x8x128xf32, #tpu.memory_space<vmem>>, vector<1x8x128xf32>
    %79 = vector.shape_cast %78 : vector<1x8x128xf32> to vector<8x128xf32>
    %80 = vector.shape_cast %76 : vector<8x128xf32> to vector<1x8x128xf32>
    tpu.vector_store %arg5[%77, %c0_49, %c0_50], %80 {strides = array<i32>} : memref<8x8x128xf32, #tpu.memory_space<vmem>>, vector<1x8x128xf32>,
    %c7_i32 = arith.constant 7 : i32
    %81 = arith.index_cast %c7_i32 : i32 to index
    %c0_51 = arith.constant 0 : index
    %c0_52 = arith.constant 0 : index
    %82 = vector.load %arg2[%81, %c0_51, %c0_52] : memref<8x8x128xf32, #tpu.memory_space<vmem>>, vector<1x8x128xf32>
    %83 = vector.shape_cast %82 : vector<1x8x128xf32> to vector<8x128xf32>
    %c0_53 = arith.constant 0 : index
    %c0_54 = arith.constant 0 : index
    %84 = vector.load %arg4[%c0_53, %c0_54] : memref<128x128xf32, #tpu.memory_space<vmem>>, vector<128x128xf32>
    %cst_55 = arith.constant dense<0.000000e+00> : vector<8x128xf32>
    %85 = tpu.matmul %76, %84, %cst_55 {dimension_numbers = #tpu.dot_dimension_numbers<[1], [0], [0], [1], [0, 0, 1, 1], [], []>} : vector<8x128xf32>, vector<128x128xf32>, vector<8x128xf32> -> vector<8x128xf32>
    %86 = arith.addf %83, %85 : vector<8x128xf32>
    %87 = math.tanh %86 : vector<8x128xf32>
    %88 = arith.index_cast %c7_i32 : i32 to index
    %c0_56 = arith.constant 0 : index
    %c0_57 = arith.constant 0 : index
    %89 = vector.load %arg5[%88, %c0_56, %c0_57] : memref<8x8x128xf32, #tpu.memory_space<vmem>>, vector<1x8x128xf32>
    %90 = vector.shape_cast %89 : vector<1x8x128xf32> to vector<8x128xf32>
    %91 = vector.shape_cast %87 : vector<8x128xf32> to vector<1x8x128xf32>
    tpu.vector_store %arg5[%88, %c0_56, %c0_57], %91 {strides = array<i32>} : memref<8x8x128xf32, #tpu.memory_space<vmem>>, vector<1x8x128xf32>,
    %c8_i32 = arith.constant 8 : i32
    %c0_58 = arith.constant 0 : index
    %c0_59 = arith.constant 0 : index
    %92 = vector.load %arg6[%c0_58, %c0_59] : memref<8x128xf32, #tpu.memory_space<vmem>>, vector<8x128xf32>
    tpu.vector_store %arg6[%c0_58, %c0_59], %87 {strides = array<i32>} : memref<8x128xf32, #tpu.memory_space<vmem>>, vector<8x128xf32>,
    return
  }
  func.func @transform_0(%arg0: i32, %arg1: i32) -> (i32, i32, i32) {
    %c0_i32 = arith.constant 0 : i32
    %c0_i32_0 = arith.constant 0 : i32
    return %arg1, %arg0, %c0_i32 : i32, i32, i32
  }
  func.func @transform_1(%arg0: i32, %arg1: i32) -> (i32, i32) {
    %c0_i32 = arith.constant 0 : i32
    %c0_i32_0 = arith.constant 0 : i32
    return %arg0, %c0_i32 : i32, i32
  }
  func.func @transform_2(%arg0: i32, %arg1: i32) -> (i32, i32) {
    %c0_i32 = arith.constant 0 : i32
    %c0_i32_0 = arith.constant 0 : i32
    %c0_i32_1 = arith.constant 0 : i32
    return %c0_i32, %c0_i32_0 : i32, i32
  }
  func.func @transform_3(%arg0: i32, %arg1: i32) -> (i32, i32, i32) {
    %c0_i32 = arith.constant 0 : i32
    %c0_i32_0 = arith.constant 0 : i32
    return %arg1, %arg0, %c0_i32 : i32, i32, i32
  }
}

module attributes {stable_mosaic.version = 11 : i64} {
  func.func @_rnn_rec_kernel(%arg0: i32, %arg1: i32, %arg2: memref<8x8x128xf32, #tpu.memory_space<vmem>>, %arg3: memref<8x128xf32, #tpu.memory_space<vmem>>, %arg4: memref<128x128xf32, #tpu.memory_space<vmem>>, %arg5: memref<8x8x128xf32, #tpu.memory_space<vmem>>, %arg6: memref<8x128xf32, #tpu.memory_space<vmem>>) attributes {dimension_semantics = [#tpu.dimension_semantics<parallel>, #tpu.dimension_semantics<arbitrary>], iteration_bounds = array<i64: 1, 1>, scalar_prefetch = 0 : i64, scratch_operands = 1 : i64, tpu.core_type = #tpu.core_type<tc>, window_params = [{transform_indices = @transform_0, window_bounds = array<i64: 8, 8, 128>}, {transform_indices = @transform_1, window_bounds = array<i64: 8, 128>}, {pipeline_mode = #tpu.pipeline_mode<synchronous>, transform_indices = @transform_2, window_bounds = array<i64: 128, 128>}, {transform_indices = @transform_3, window_bounds = array<i64: 8, 8, 128>}]} {
    %c0_i32 = arith.constant 0 : i32
    %0 = arith.cmpi eq, %arg1, %c0_i32 : i32
    %1 = arith.extui %0 : i1 to i32
    %c0_i32_0 = arith.constant 0 : i32
    %2 = arith.cmpi ne, %1, %c0_i32_0 : i32
    scf.if %2 {
      %c0_60 = arith.constant 0 : index
      %c0_61 = arith.constant 0 : index
      %93 = vector.load %arg3[%c0_60, %c0_61] : memref<8x128xf32, #tpu.memory_space<vmem>>, vector<8x128xf32>
      %c0_62 = arith.constant 0 : index
      %c0_63 = arith.constant 0 : index
      %94 = vector.load %arg6[%c0_62, %c0_63] : memref<8x128xf32, #tpu.memory_space<vmem>>, vector<8x128xf32>
      tpu.vector_store %arg6[%c0_62, %c0_63], %93 {strides = array<i32>} : memref<8x128xf32, #tpu.memory_space<vmem>>, vector<8x128xf32>,
    } else {
    }
    %c0 = arith.constant 0 : index
    %c0_1 = arith.constant 0 : index
    %3 = vector.load %arg6[%c0, %c0_1] : memref<8x128xf32, #tpu.memory_space<vmem>>, vector<8x128xf32>
    %c0_i32_2 = arith.constant 0 : i32
    %4 = arith.index_cast %c0_i32_2 : i32 to index
    %c0_3 = arith.constant 0 : index
    %c0_4 = arith.constant 0 : index
    %5 = vector.load %arg2[%4, %c0_3, %c0_4] : memref<8x8x128xf32, #tpu.memory_space<vmem>>, vector<1x8x128xf32>
    %6 = vector.shape_cast %5 : vector<1x8x128xf32> to vector<8x128xf32>
    %c0_5 = arith.constant 0 : index
    %c0_6 = arith.constant 0 : index
    %7 = vector.load %arg4[%c0_5, %c0_6] : memref<128x128xf32, #tpu.memory_space<vmem>>, vector<128x128xf32>
    %cst = arith.constant dense<0.000000e+00> : vector<8x128xf32>
    %8 = tpu.matmul %3, %7, %cst {dimension_numbers = #tpu.dot_dimension_numbers<[1], [0], [0], [1], [0, 0, 1, 1], [], []>} : vector<8x128xf32>, vector<128x128xf32>, vector<8x128xf32> -> vector<8x128xf32>
    %9 = arith.addf %6, %8 : vector<8x128xf32>
    %10 = math.tanh %9 : vector<8x128xf32>
    %11 = arith.index_cast %c0_i32_2 : i32 to index
    %c0_7 = arith.constant 0 : index
    %c0_8 = arith.constant 0 : index
    %12 = vector.load %arg5[%11, %c0_7, %c0_8] : memref<8x8x128xf32, #tpu.memory_space<vmem>>, vector<1x8x128xf32>
    %13 = vector.shape_cast %12 : vector<1x8x128xf32> to vector<8x128xf32>
    %14 = vector.shape_cast %10 : vector<8x128xf32> to vector<1x8x128xf32>
    tpu.vector_store %arg5[%11, %c0_7, %c0_8], %14 {strides = array<i32>} : memref<8x8x128xf32, #tpu.memory_space<vmem>>, vector<1x8x128xf32>,
    %c1_i32 = arith.constant 1 : i32
    %15 = arith.index_cast %c1_i32 : i32 to index
    %c0_9 = arith.constant 0 : index
    %c0_10 = arith.constant 0 : index
    %16 = vector.load %arg2[%15, %c0_9, %c0_10] : memref<8x8x128xf32, #tpu.memory_space<vmem>>, vector<1x8x128xf32>
    %17 = vector.shape_cast %16 : vector<1x8x128xf32> to vector<8x128xf32>
    %c0_11 = arith.constant 0 : index
    %c0_12 = arith.constant 0 : index
    %18 = vector.load %arg4[%c0_11, %c0_12] : memref<128x128xf32, #tpu.memory_space<vmem>>, vector<128x128xf32>
    %cst_13 = arith.constant dense<0.000000e+00> : vector<8x128xf32>
    %19 = tpu.matmul %10, %18, %cst_13 {dimension_numbers = #tpu.dot_dimension_numbers<[1], [0], [0], [1], [0, 0, 1, 1], [], []>} : vector<8x128xf32>, vector<128x128xf32>, vector<8x128xf32> -> vector<8x128xf32>
    %20 = arith.addf %17, %19 : vector<8x128xf32>
    %21 = math.tanh %20 : vector<8x128xf32>
    %22 = arith.index_cast %c1_i32 : i32 to index
    %c0_14 = arith.constant 0 : index
    %c0_15 = arith.constant 0 : index
    %23 = vector.load %arg5[%22, %c0_14, %c0_15] : memref<8x8x128xf32, #tpu.memory_space<vmem>>, vector<1x8x128xf32>
    %24 = vector.shape_cast %23 : vector<1x8x128xf32> to vector<8x128xf32>
    %25 = vector.shape_cast %21 : vector<8x128xf32> to vector<1x8x128xf32>
    tpu.vector_store %arg5[%22, %c0_14, %c0_15], %25 {strides = array<i32>} : memref<8x8x128xf32, #tpu.memory_space<vmem>>, vector<1x8x128xf32>,
    %c2_i32 = arith.constant 2 : i32
    %26 = arith.index_cast %c2_i32 : i32 to index
    %c0_16 = arith.constant 0 : index
    %c0_17 = arith.constant 0 : index
    %27 = vector.load %arg2[%26, %c0_16, %c0_17] : memref<8x8x128xf32, #tpu.memory_space<vmem>>, vector<1x8x128xf32>
    %28 = vector.shape_cast %27 : vector<1x8x128xf32> to vector<8x128xf32>
    %c0_18 = arith.constant 0 : index
    %c0_19 = arith.constant 0 : index
    %29 = vector.load %arg4[%c0_18, %c0_19] : memref<128x128xf32, #tpu.memory_space<vmem>>, vector<128x128xf32>
    %cst_20 = arith.constant dense<0.000000e+00> : vector<8x128xf32>
    %30 = tpu.matmul %21, %29, %cst_20 {dimension_numbers = #tpu.dot_dimension_numbers<[1], [0], [0], [1], [0, 0, 1, 1], [], []>} : vector<8x128xf32>, vector<128x128xf32>, vector<8x128xf32> -> vector<8x128xf32>
    %31 = arith.addf %28, %30 : vector<8x128xf32>
    %32 = math.tanh %31 : vector<8x128xf32>
    %33 = arith.index_cast %c2_i32 : i32 to index
    %c0_21 = arith.constant 0 : index
    %c0_22 = arith.constant 0 : index
    %34 = vector.load %arg5[%33, %c0_21, %c0_22] : memref<8x8x128xf32, #tpu.memory_space<vmem>>, vector<1x8x128xf32>
    %35 = vector.shape_cast %34 : vector<1x8x128xf32> to vector<8x128xf32>
    %36 = vector.shape_cast %32 : vector<8x128xf32> to vector<1x8x128xf32>
    tpu.vector_store %arg5[%33, %c0_21, %c0_22], %36 {strides = array<i32>} : memref<8x8x128xf32, #tpu.memory_space<vmem>>, vector<1x8x128xf32>,
    %c3_i32 = arith.constant 3 : i32
    %37 = arith.index_cast %c3_i32 : i32 to index
    %c0_23 = arith.constant 0 : index
    %c0_24 = arith.constant 0 : index
    %38 = vector.load %arg2[%37, %c0_23, %c0_24] : memref<8x8x128xf32, #tpu.memory_space<vmem>>, vector<1x8x128xf32>
    %39 = vector.shape_cast %38 : vector<1x8x128xf32> to vector<8x128xf32>
    %c0_25 = arith.constant 0 : index
    %c0_26 = arith.constant 0 : index
    %40 = vector.load %arg4[%c0_25, %c0_26] : memref<128x128xf32, #tpu.memory_space<vmem>>, vector<128x128xf32>
    %cst_27 = arith.constant dense<0.000000e+00> : vector<8x128xf32>
    %41 = tpu.matmul %32, %40, %cst_27 {dimension_numbers = #tpu.dot_dimension_numbers<[1], [0], [0], [1], [0, 0, 1, 1], [], []>} : vector<8x128xf32>, vector<128x128xf32>, vector<8x128xf32> -> vector<8x128xf32>
    %42 = arith.addf %39, %41 : vector<8x128xf32>
    %43 = math.tanh %42 : vector<8x128xf32>
    %44 = arith.index_cast %c3_i32 : i32 to index
    %c0_28 = arith.constant 0 : index
    %c0_29 = arith.constant 0 : index
    %45 = vector.load %arg5[%44, %c0_28, %c0_29] : memref<8x8x128xf32, #tpu.memory_space<vmem>>, vector<1x8x128xf32>
    %46 = vector.shape_cast %45 : vector<1x8x128xf32> to vector<8x128xf32>
    %47 = vector.shape_cast %43 : vector<8x128xf32> to vector<1x8x128xf32>
    tpu.vector_store %arg5[%44, %c0_28, %c0_29], %47 {strides = array<i32>} : memref<8x8x128xf32, #tpu.memory_space<vmem>>, vector<1x8x128xf32>,
    %c4_i32 = arith.constant 4 : i32
    %48 = arith.index_cast %c4_i32 : i32 to index
    %c0_30 = arith.constant 0 : index
    %c0_31 = arith.constant 0 : index
    %49 = vector.load %arg2[%48, %c0_30, %c0_31] : memref<8x8x128xf32, #tpu.memory_space<vmem>>, vector<1x8x128xf32>
    %50 = vector.shape_cast %49 : vector<1x8x128xf32> to vector<8x128xf32>
    %c0_32 = arith.constant 0 : index
    %c0_33 = arith.constant 0 : index
    %51 = vector.load %arg4[%c0_32, %c0_33] : memref<128x128xf32, #tpu.memory_space<vmem>>, vector<128x128xf32>
    %cst_34 = arith.constant dense<0.000000e+00> : vector<8x128xf32>
    %52 = tpu.matmul %43, %51, %cst_34 {dimension_numbers = #tpu.dot_dimension_numbers<[1], [0], [0], [1], [0, 0, 1, 1], [], []>} : vector<8x128xf32>, vector<128x128xf32>, vector<8x128xf32> -> vector<8x128xf32>
    %53 = arith.addf %50, %52 : vector<8x128xf32>
    %54 = math.tanh %53 : vector<8x128xf32>
    %55 = arith.index_cast %c4_i32 : i32 to index
    %c0_35 = arith.constant 0 : index
    %c0_36 = arith.constant 0 : index
    %56 = vector.load %arg5[%55, %c0_35, %c0_36] : memref<8x8x128xf32, #tpu.memory_space<vmem>>, vector<1x8x128xf32>
    %57 = vector.shape_cast %56 : vector<1x8x128xf32> to vector<8x128xf32>
    %58 = vector.shape_cast %54 : vector<8x128xf32> to vector<1x8x128xf32>
    tpu.vector_store %arg5[%55, %c0_35, %c0_36], %58 {strides = array<i32>} : memref<8x8x128xf32, #tpu.memory_space<vmem>>, vector<1x8x128xf32>,
    %c5_i32 = arith.constant 5 : i32
    %59 = arith.index_cast %c5_i32 : i32 to index
    %c0_37 = arith.constant 0 : index
    %c0_38 = arith.constant 0 : index
    %60 = vector.load %arg2[%59, %c0_37, %c0_38] : memref<8x8x128xf32, #tpu.memory_space<vmem>>, vector<1x8x128xf32>
    %61 = vector.shape_cast %60 : vector<1x8x128xf32> to vector<8x128xf32>
    %c0_39 = arith.constant 0 : index
    %c0_40 = arith.constant 0 : index
    %62 = vector.load %arg4[%c0_39, %c0_40] : memref<128x128xf32, #tpu.memory_space<vmem>>, vector<128x128xf32>
    %cst_41 = arith.constant dense<0.000000e+00> : vector<8x128xf32>
    %63 = tpu.matmul %54, %62, %cst_41 {dimension_numbers = #tpu.dot_dimension_numbers<[1], [0], [0], [1], [0, 0, 1, 1], [], []>} : vector<8x128xf32>, vector<128x128xf32>, vector<8x128xf32> -> vector<8x128xf32>
    %64 = arith.addf %61, %63 : vector<8x128xf32>
    %65 = math.tanh %64 : vector<8x128xf32>
    %66 = arith.index_cast %c5_i32 : i32 to index
    %c0_42 = arith.constant 0 : index
    %c0_43 = arith.constant 0 : index
    %67 = vector.load %arg5[%66, %c0_42, %c0_43] : memref<8x8x128xf32, #tpu.memory_space<vmem>>, vector<1x8x128xf32>
    %68 = vector.shape_cast %67 : vector<1x8x128xf32> to vector<8x128xf32>
    %69 = vector.shape_cast %65 : vector<8x128xf32> to vector<1x8x128xf32>
    tpu.vector_store %arg5[%66, %c0_42, %c0_43], %69 {strides = array<i32>} : memref<8x8x128xf32, #tpu.memory_space<vmem>>, vector<1x8x128xf32>,
    %c6_i32 = arith.constant 6 : i32
    %70 = arith.index_cast %c6_i32 : i32 to index
    %c0_44 = arith.constant 0 : index
    %c0_45 = arith.constant 0 : index
    %71 = vector.load %arg2[%70, %c0_44, %c0_45] : memref<8x8x128xf32, #tpu.memory_space<vmem>>, vector<1x8x128xf32>
    %72 = vector.shape_cast %71 : vector<1x8x128xf32> to vector<8x128xf32>
    %c0_46 = arith.constant 0 : index
    %c0_47 = arith.constant 0 : index
    %73 = vector.load %arg4[%c0_46, %c0_47] : memref<128x128xf32, #tpu.memory_space<vmem>>, vector<128x128xf32>
    %cst_48 = arith.constant dense<0.000000e+00> : vector<8x128xf32>
    %74 = tpu.matmul %65, %73, %cst_48 {dimension_numbers = #tpu.dot_dimension_numbers<[1], [0], [0], [1], [0, 0, 1, 1], [], []>} : vector<8x128xf32>, vector<128x128xf32>, vector<8x128xf32> -> vector<8x128xf32>
    %75 = arith.addf %72, %74 : vector<8x128xf32>
    %76 = math.tanh %75 : vector<8x128xf32>
    %77 = arith.index_cast %c6_i32 : i32 to index
    %c0_49 = arith.constant 0 : index
    %c0_50 = arith.constant 0 : index
    %78 = vector.load %arg5[%77, %c0_49, %c0_50] : memref<8x8x128xf32, #tpu.memory_space<vmem>>, vector<1x8x128xf32>
    %79 = vector.shape_cast %78 : vector<1x8x128xf32> to vector<8x128xf32>
    %80 = vector.shape_cast %76 : vector<8x128xf32> to vector<1x8x128xf32>
    tpu.vector_store %arg5[%77, %c0_49, %c0_50], %80 {strides = array<i32>} : memref<8x8x128xf32, #tpu.memory_space<vmem>>, vector<1x8x128xf32>,
    %c7_i32 = arith.constant 7 : i32
    %81 = arith.index_cast %c7_i32 : i32 to index
    %c0_51 = arith.constant 0 : index
    %c0_52 = arith.constant 0 : index
    %82 = vector.load %arg2[%81, %c0_51, %c0_52] : memref<8x8x128xf32, #tpu.memory_space<vmem>>, vector<1x8x128xf32>
    %83 = vector.shape_cast %82 : vector<1x8x128xf32> to vector<8x128xf32>
    %c0_53 = arith.constant 0 : index
    %c0_54 = arith.constant 0 : index
    %84 = vector.load %arg4[%c0_53, %c0_54] : memref<128x128xf32, #tpu.memory_space<vmem>>, vector<128x128xf32>
    %cst_55 = arith.constant dense<0.000000e+00> : vector<8x128xf32>
    %85 = tpu.matmul %76, %84, %cst_55 {dimension_numbers = #tpu.dot_dimension_numbers<[1], [0], [0], [1], [0, 0, 1, 1], [], []>} : vector<8x128xf32>, vector<128x128xf32>, vector<8x128xf32> -> vector<8x128xf32>
    %86 = arith.addf %83, %85 : vector<8x128xf32>
    %87 = math.tanh %86 : vector<8x128xf32>
    %88 = arith.index_cast %c7_i32 : i32 to index
    %c0_56 = arith.constant 0 : index
    %c0_57 = arith.constant 0 : index
    %89 = vector.load %arg5[%88, %c0_56, %c0_57] : memref<8x8x128xf32, #tpu.memory_space<vmem>>, vector<1x8x128xf32>
    %90 = vector.shape_cast %89 : vector<1x8x128xf32> to vector<8x128xf32>
    %91 = vector.shape_cast %87 : vector<8x128xf32> to vector<1x8x128xf32>
    tpu.vector_store %arg5[%88, %c0_56, %c0_57], %91 {strides = array<i32>} : memref<8x8x128xf32, #tpu.memory_space<vmem>>, vector<1x8x128xf32>,
    %c8_i32 = arith.constant 8 : i32
    %c0_58 = arith.constant 0 : index
    %c0_59 = arith.constant 0 : index
    %92 = vector.load %arg6[%c0_58, %c0_59] : memref<8x128xf32, #tpu.memory_space<vmem>>, vector<8x128xf32>
    tpu.vector_store %arg6[%c0_58, %c0_59], %87 {strides = array<i32>} : memref<8x128xf32, #tpu.memory_space<vmem>>, vector<8x128xf32>,
    return
  }
  func.func @transform_0(%arg0: i32, %arg1: i32) -> (i32, i32, i32) {
    %c0_i32 = arith.constant 0 : i32
    %c0_i32_0 = arith.constant 0 : i32
    return %arg1, %arg0, %c0_i32 : i32, i32, i32
  }
  func.func @transform_1(%arg0: i32, %arg1: i32) -> (i32, i32) {
    %c0_i32 = arith.constant 0 : i32
    %c0_i32_0 = arith.constant 0 : i32
    return %arg0, %c0_i32 : i32, i32
  }
  func.func @transform_2(%arg0: i32, %arg1: i32) -> (i32, i32) {
    %c0_i32 = arith.constant 0 : i32
    %c0_i32_0 = arith.constant 0 : i32
    %c0_i32_1 = arith.constant 0 : i32
    return %c0_i32, %c0_i32_0 : i32, i32
  }
  func.func @transform_3(%arg0: i32, %arg1: i32) -> (i32, i32, i32) {
    %c0_i32 = arith.constant 0 : i32
    %c0_i32_0 = arith.constant 0 : i32
    return %arg1, %arg0, %c0_i32 : i32, i32, i32
  }
}

</mosaic_0001>

<bundles_post_ra>
// kernel: _forward_sequence_impl.1
= control target key start
LH: loop header
LB: loop body
LE: loop exit
PB: predicated region body
PF: predicated region fallthrough
CT: control target
= control target key end

     0   :  { %v1401_v0 = vmov 0.0|0.0   ;;  %vm1402_vm0 = vmmov 0   ;;  %v1403_v4 = vmov 0.0   ;;  %s1683_s2 = inlined_call_operand.vmem [shape: f32[128,128], index: 2, kind: input, shape index: {}]   ;;  %s1684_s1 = inlined_call_operand.vmem [shape: f32[8,128], index: 1, kind: input, shape index: {}]   ;;  %s1685_s0 = inlined_call_operand.vmem [shape: f32[8,8,128], index: 0, kind: input, shape index: {}]   ;;  %s1686_s3 = inlined_call_operand.vmem [shape: f32[8,8,128], index: 3, kind: output, shape index: {}]  }
   0x1   :  { %1190 = vmatprep.subr.bf16.mxu0 %v1401_v0  ;;  %v22_v1 = vld [vmem:[%s1683_s2] sm:$0xff]  ;;  %v23_v2 = vld [vmem:[%s1683_s2 + $0x8] sm:$0xff]  ;;  %v24_v3 = vld [vmem:[%s1683_s2 + $0x10] sm:$0xff]  ;;  %942 = vmatprep.mubr.msk.f32.mxu0 %vm1402_vm0, %v1403_v4 }
   0x2   :  { %v1436_v5 = vpack.c.bf16 %v23_v2, %v22_v1  ;;  %v25_v6 = vld [vmem:[%s1683_s2 + $0x18] sm:$0xff]  ;;  %1214 = vmatprep.subr.bf16.mxu1 %v1401_v0  ;;  %977 = vmatprep.mubr.msk.f32.mxu1 %vm1402_vm0, %v1403_v4  ;;  %v26_v8 = vld [vmem:[%s1683_s2 + $0x20] sm:$0xff]  ;;  %v27_v9 = vld [vmem:[%s1683_s2 + $0x28] sm:$0xff] }
   0x3   :  { %v1445_v7 = vpack.c.bf16 %v25_v6, %v24_v3  ;;  %v1457_v10 = vpack.c.bf16 %v27_v9, %v26_v8  ;;  %v28_v11 = vld [vmem:[%s1683_s2 + $0x30] sm:$0xff]  ;;  %v29_v12 = vld [vmem:[%s1683_s2 + $0x38] sm:$0xff]  ;;  %v30_v14 = vld [vmem:[%s1683_s2 + $0x40] sm:$0xff] }
   0x4   :  { %1192 = vmatpush3.bf16.msra.mxu0 %v1436_v5  ;;  %1216 = vmatpush3.bf16.msra.mxu1 %v1436_v5  ;;  %v1469_v13 = vpack.c.bf16 %v29_v12, %v28_v11  ;;  %v31_v15 = vld [vmem:[%s1683_s2 + $0x48] sm:$0xff]  ;;  %v32_v17 = vld [vmem:[%s1683_s2 + $0x50] sm:$0xff]  ;;  %v33_v18 = vld [vmem:[%s1683_s2 + $0x58] sm:$0xff] }
   0x5   :  { %1193 = vmatprep.subr.bf16.mxu0 %v1401_v0  ;;  %1217 = vmatprep.subr.bf16.mxu1 %v1401_v0  ;;  %v1481_v16 = vpack.c.bf16 %v31_v15, %v30_v14  ;;  %v1493_v19 = vpack.c.bf16 %v33_v18, %v32_v17  ;;  %v34_v20 = vld [vmem:[%s1683_s2 + $0x60] sm:$0xff]  ;;  %v35_v21 = vld [vmem:[%s1683_s2 + $0x68] sm:$0xff]  ;;  %v36_v23 = vld [vmem:[%s1683_s2 + $0x70] sm:$0xff] }
   0x6   :  { %v1505_v22 = vpack.c.bf16 %v35_v21, %v34_v20  ;;  %v37_v24 = vld [vmem:[%s1683_s2 + $0x78] sm:$0xff]  ;;  %v18_v26 = vld [vmem:[%s1684_s1] sm:$0xff]  ;;  %v760_v32 = vld [vmem:[%s1685_s0 + $0x8] sm:$0xff] }
   0x7   :  { %v1517_v25 = vpack.c.bf16 %v37_v24, %v36_v23  ;;  %v21_v27 = vld [vmem:[%s1685_s0] sm:$0xff]  ;;  %v762_v37 = vld [vmem:[%s1685_s0 + $0x10] sm:$0xff]  ;;  %v764_v42 = vld [vmem:[%s1685_s0 + $0x18] sm:$0xff] }
   0x8   :  { %1195 = vmatpush3.bf16.msra.mxu0 %v1445_v7  ;;  %1219 = vmatpush3.bf16.msra.mxu1 %v1445_v7  ;;  %v766_v47 = vld [vmem:[%s1685_s0 + $0x20] sm:$0xff]  ;;  %v768_v52 = vld [vmem:[%s1685_s0 + $0x28] sm:$0xff]  ;;  %v770_v57 = vld [vmem:[%s1685_s0 + $0x30] sm:$0xff] }
   0x9   :  { %1196 = vmatprep.subr.bf16.mxu0 %v1401_v0  ;;  %1220 = vmatprep.subr.bf16.mxu1 %v1401_v0  ;;  %v772_v62 = vld [vmem:[%s1685_s0 + $0x38] sm:$0xff] }
   0xc   :  { %1198 = vmatpush3.bf16.msra.mxu0 %v1457_v10  ;;  %1222 = vmatpush3.bf16.msra.mxu1 %v1457_v10 }
   0xd   :  { %1199 = vmatprep.subr.bf16.mxu0 %v1401_v0  ;;  %1223 = vmatprep.subr.bf16.mxu1 %v1401_v0 }
  0x10   :  { %1201 = vmatpush3.bf16.msra.mxu0 %v1469_v13  ;;  %1225 = vmatpush3.bf16.msra.mxu1 %v1469_v13 }
  0x11   :  { %1202 = vmatprep.subr.bf16.mxu0 %v1401_v0  ;;  %1226 = vmatprep.subr.bf16.mxu1 %v1401_v0 }
  0x14   :  { %1204 = vmatpush3.bf16.msra.mxu0 %v1481_v16  ;;  %1228 = vmatpush3.bf16.msra.mxu1 %v1481_v16 }
  0x15   :  { %1205 = vmatprep.subr.bf16.mxu0 %v1401_v0  ;;  %1229 = vmatprep.subr.bf16.mxu1 %v1401_v0 }
  0x18   :  { %1207 = vmatpush3.bf16.msra.mxu0 %v1493_v19  ;;  %1231 = vmatpush3.bf16.msra.mxu1 %v1493_v19 }
  0x19   :  { %1208 = vmatprep.subr.bf16.mxu0 %v1401_v0  ;;  %1232 = vmatprep.subr.bf16.mxu1 %v1401_v0 }
  0x1c   :  { %1210 = vmatpush3.bf16.msra.mxu0 %v1505_v22  ;;  %1234 = vmatpush3.bf16.msra.mxu1 %v1505_v22 }
  0x1d   :  { %1211 = vmatprep.subr.bf16.mxu0 %v1401_v0  ;;  %1235 = vmatprep.subr.bf16.mxu1 %v1401_v0 }
  0x20   :  { %1213 = vmatpush3.bf16.msra.mxu0 %v1517_v25  ;;  %1237 = vmatpush3.bf16.msra.mxu1 %v1517_v25 }
  0x21   :  { %1238 = vmatprep.subr.bf16.mxu0 %v1401_v0  ;;  %1262 = vmatprep.subr.bf16.mxu1 %v1401_v0 }
  0x23   :  { %943 = vmatmul.mubr.f32.vlgmr.msra.gmra.mrb[0].mxu0 %v18_v26 }
  0x24   :  { %1240 = vmatpush3.bf16.msra.mxu0 %v1436_v5  ;;  %1012 = vmatprep.mubr.msk.f32.mxu0 %vm1402_vm0, %v1403_v4 }
  0x25   :  { %1241 = vmatprep.subr.bf16.mxu0 %v1401_v0 }
  0x28   :  { %1243 = vmatpush3.bf16.msra.mxu0 %v1445_v7 }
  0x29   :  { %1244 = vmatprep.subr.bf16.mxu0 %v1401_v0 }
  0x2c   :  { %1246 = vmatpush3.bf16.msra.mxu0 %v1457_v10 }
  0x2d   :  { %1247 = vmatprep.subr.bf16.mxu0 %v1401_v0 }
  0x30   :  { %1249 = vmatpush3.bf16.msra.mxu0 %v1469_v13 }
  0x31   :  { %1250 = vmatprep.subr.bf16.mxu0 %v1401_v0 }
  0x34   :  { %1252 = vmatpush3.bf16.msra.mxu0 %v1481_v16 }
  0x35   :  { %1253 = vmatprep.subr.bf16.mxu0 %v1401_v0 }
  0x38   :  { %1255 = vmatpush3.bf16.msra.mxu0 %v1493_v19 }
  0x39   :  { %1256 = vmatprep.subr.bf16.mxu0 %v1401_v0 }
  0x3c   :  { %1258 = vmatpush3.bf16.msra.mxu0 %v1505_v22 }
  0x3d   :  { %1259 = vmatprep.subr.bf16.mxu0 %v1401_v0 }
  0x40   :  { %1261 = vmatpush3.bf16.msra.mxu0 %v1517_v25 }
  0x41   :  { %1286 = vmatprep.subr.bf16.mxu0 %v1401_v0 }
  0xf6   :  { %v104_v28 = vpop.f32.mrb[0].mxu0 }
  0xf7   :  { %v108_v29 = vadd.f32 %v104_v28, %v21_v27  ;;  %v944_v30 = vpop.f32.mrb[1].mxu0 }
  0xf9   :  { %1385 = vtanh.f32 %v108_v29 }
 0x103   :  { %v1386_v31 = vpop.eup %1385 }
 0x104   :  { %110 = vst [vmem:[%s1686_s3] sm:$0xff] %v1386_v31  ;;  %978 = vmatmul.mubr.f32.vlgmr.msra.gmra.mrb[0].mxu1 %v1386_v31 }
 0x105   :  { %1264 = vmatpush3.bf16.msra.mxu1 %v1436_v5  ;;  %1047 = vmatprep.mubr.msk.f32.mxu1 %vm1402_vm0, %v1403_v4 }
 0x106   :  { %1265 = vmatprep.subr.bf16.mxu1 %v1401_v0 }
 0x109   :  { %1267 = vmatpush3.bf16.msra.mxu1 %v1445_v7 }
 0x10a   :  { %1268 = vmatprep.subr.bf16.mxu1 %v1401_v0 }
 0x10d   :  { %1270 = vmatpush3.bf16.msra.mxu1 %v1457_v10 }
 0x10e   :  { %1271 = vmatprep.subr.bf16.mxu1 %v1401_v0 }
 0x111   :  { %1273 = vmatpush3.bf16.msra.mxu1 %v1469_v13 }
 0x112   :  { %1274 = vmatprep.subr.bf16.mxu1 %v1401_v0 }
 0x115   :  { %1276 = vmatpush3.bf16.msra.mxu1 %v1481_v16 }
 0x116   :  { %1277 = vmatprep.subr.bf16.mxu1 %v1401_v0 }
 0x119   :  { %1279 = vmatpush3.bf16.msra.mxu1 %v1493_v19 }
 0x11a   :  { %1280 = vmatprep.subr.bf16.mxu1 %v1401_v0 }
 0x11d   :  { %1282 = vmatpush3.bf16.msra.mxu1 %v1505_v22 }
 0x11e   :  { %1283 = vmatprep.subr.bf16.mxu1 %v1401_v0 }
 0x121   :  { %1285 = vmatpush3.bf16.msra.mxu1 %v1517_v25 }
 0x122   :  { %1310 = vmatprep.subr.bf16.mxu1 %v1401_v0 }
 0x1d7   :  { %v195_v33 = vpop.f32.mrb[0].mxu1 }
 0x1d8   :  { %v199_v34 = vadd.f32 %v760_v32, %v195_v33  ;;  %v979_v35 = vpop.f32.mrb[1].mxu1 }
 0x1da   :  { %1387 = vtanh.f32 %v199_v34 }
 0x1e4   :  { %v1388_v36 = vpop.eup %1387 }
 0x1e5   :  { %761 = vst [vmem:[%s1686_s3 + $0x8] sm:$0xff] %v1388_v36  ;;  %1013 = vmatmul.mubr.f32.vlgmr.msra.gmra.mrb[2].mxu0 %v1388_v36 }
 0x1e6   :  { %1288 = vmatpush3.bf16.msra.mxu0 %v1436_v5  ;;  %1082 = vmatprep.mubr.msk.f32.mxu0 %vm1402_vm0, %v1403_v4 }
 0x1e7   :  { %1289 = vmatprep.subr.bf16.mxu0 %v1401_v0 }
 0x1ea   :  { %1291 = vmatpush3.bf16.msra.mxu0 %v1445_v7 }
 0x1eb   :  { %1292 = vmatprep.subr.bf16.mxu0 %v1401_v0 }
 0x1ee   :  { %1294 = vmatpush3.bf16.msra.mxu0 %v1457_v10 }
 0x1ef   :  { %1295 = vmatprep.subr.bf16.mxu0 %v1401_v0 }
 0x1f2   :  { %1297 = vmatpush3.bf16.msra.mxu0 %v1469_v13 }
 0x1f3   :  { %1298 = vmatprep.subr.bf16.mxu0 %v1401_v0 }
 0x1f6   :  { %1300 = vmatpush3.bf16.msra.mxu0 %v1481_v16 }
 0x1f7   :  { %1301 = vmatprep.subr.bf16.mxu0 %v1401_v0 }
 0x1fa   :  { %1303 = vmatpush3.bf16.msra.mxu0 %v1493_v19 }
 0x1fb   :  { %1304 = vmatprep.subr.bf16.mxu0 %v1401_v0 }
 0x1fe   :  { %1306 = vmatpush3.bf16.msra.mxu0 %v1505_v22 }
 0x1ff   :  { %1307 = vmatprep.subr.bf16.mxu0 %v1401_v0 }
 0x202   :  { %1309 = vmatpush3.bf16.msra.mxu0 %v1517_v25 }
 0x203   :  { %1334 = vmatprep.subr.bf16.mxu0 %v1401_v0 }
 0x2b8   :  { %v287_v38 = vpop.f32.mrb[2].mxu0 }
 0x2b9   :  { %v291_v39 = vadd.f32 %v762_v37, %v287_v38  ;;  %v1014_v40 = vpop.f32.mrb[3].mxu0 }
 0x2bb   :  { %1389 = vtanh.f32 %v291_v39 }
 0x2c5   :  { %v1390_v41 = vpop.eup %1389 }
 0x2c6   :  { %763 = vst [vmem:[%s1686_s3 + $0x10] sm:$0xff] %v1390_v41  ;;  %1048 = vmatmul.mubr.f32.vlgmr.msra.gmra.mrb[2].mxu1 %v1390_v41 }
 0x2c7   :  { %1312 = vmatpush3.bf16.msra.mxu1 %v1436_v5  ;;  %1117 = vmatprep.mubr.msk.f32.mxu1 %vm1402_vm0, %v1403_v4 }
 0x2c8   :  { %1313 = vmatprep.subr.bf16.mxu1 %v1401_v0 }
 0x2cb   :  { %1315 = vmatpush3.bf16.msra.mxu1 %v1445_v7 }
 0x2cc   :  { %1316 = vmatprep.subr.bf16.mxu1 %v1401_v0 }
 0x2cf   :  { %1318 = vmatpush3.bf16.msra.mxu1 %v1457_v10 }
 0x2d0   :  { %1319 = vmatprep.subr.bf16.mxu1 %v1401_v0 }
 0x2d3   :  { %1321 = vmatpush3.bf16.msra.mxu1 %v1469_v13 }
 0x2d4   :  { %1322 = vmatprep.subr.bf16.mxu1 %v1401_v0 }
 0x2d7   :  { %1324 = vmatpush3.bf16.msra.mxu1 %v1481_v16 }
 0x2d8   :  { %1325 = vmatprep.subr.bf16.mxu1 %v1401_v0 }
 0x2db   :  { %1327 = vmatpush3.bf16.msra.mxu1 %v1493_v19 }
 0x2dc   :  { %1328 = vmatprep.subr.bf16.mxu1 %v1401_v0 }
 0x2df   :  { %1330 = vmatpush3.bf16.msra.mxu1 %v1505_v22 }
 0x2e0   :  { %1331 = vmatprep.subr.bf16.mxu1 %v1401_v0 }
 0x2e3   :  { %1333 = vmatpush3.bf16.msra.mxu1 %v1517_v25 }
 0x2e4   :  { %1358 = vmatprep.subr.bf16.mxu1 %v1401_v0 }
 0x399   :  { %v379_v43 = vpop.f32.mrb[2].mxu1 }
 0x39a   :  { %v383_v44 = vadd.f32 %v764_v42, %v379_v43  ;;  %v1049_v45 = vpop.f32.mrb[3].mxu1 }
 0x39c   :  { %1391 = vtanh.f32 %v383_v44 }
 0x3a6   :  { %v1392_v46 = vpop.eup %1391 }
 0x3a7   :  { %765 = vst [vmem:[%s1686_s3 + $0x18] sm:$0xff] %v1392_v46  ;;  %1083 = vmatmul.mubr.f32.vlgmr.msra.gmra.mrb[4].mxu0 %v1392_v46 }
 0x3a8   :  { %1336 = vmatpush3.bf16.msra.mxu0 %v1436_v5  ;;  %1152 = vmatprep.mubr.msk.f32.mxu0 %vm1402_vm0, %v1403_v4 }
 0x3a9   :  { %1337 = vmatprep.subr.bf16.mxu0 %v1401_v0 }
 0x3ac   :  { %1339 = vmatpush3.bf16.msra.mxu0 %v1445_v7 }
 0x3ad   :  { %1340 = vmatprep.subr.bf16.mxu0 %v1401_v0 }
 0x3b0   :  { %1342 = vmatpush3.bf16.msra.mxu0 %v1457_v10 }
 0x3b1   :  { %1343 = vmatprep.subr.bf16.mxu0 %v1401_v0 }
 0x3b4   :  { %1345 = vmatpush3.bf16.msra.mxu0 %v1469_v13 }
 0x3b5   :  { %1346 = vmatprep.subr.bf16.mxu0 %v1401_v0 }
 0x3b8   :  { %1348 = vmatpush3.bf16.msra.mxu0 %v1481_v16 }
 0x3b9   :  { %1349 = vmatprep.subr.bf16.mxu0 %v1401_v0 }
 0x3bc   :  { %1351 = vmatpush3.bf16.msra.mxu0 %v1493_v19 }
 0x3bd   :  { %1352 = vmatprep.subr.bf16.mxu0 %v1401_v0 }
 0x3c0   :  { %1354 = vmatpush3.bf16.msra.mxu0 %v1505_v22 }
 0x3c1   :  { %1355 = vmatprep.subr.bf16.mxu0 %v1401_v0 }
 0x3c4   :  { %1357 = vmatpush3.bf16.msra.mxu0 %v1517_v25 }
 0x47a   :  { %v471_v48 = vpop.f32.mrb[4].mxu0 }
 0x47b   :  { %v475_v49 = vadd.f32 %v766_v47, %v471_v48  ;;  %v1084_v50 = vpop.f32.mrb[5].mxu0 }
 0x47d   :  { %1393 = vtanh.f32 %v475_v49 }
 0x487   :  { %v1394_v51 = vpop.eup %1393 }
 0x488   :  { %767 = vst [vmem:[%s1686_s3 + $0x20] sm:$0xff] %v1394_v51  ;;  %1118 = vmatmul.mubr.f32.vlgmr.msra.gmra.mrb[4].mxu1 %v1394_v51 }
 0x489   :  { %1360 = vmatpush3.bf16.msra.mxu1 %v1436_v5  ;;  %1187 = vmatprep.mubr.msk.f32.mxu1 %vm1402_vm0, %v1403_v4 }
 0x48a   :  { %1361 = vmatprep.subr.bf16.mxu1 %v1401_v0 }
 0x48d   :  { %1363 = vmatpush3.bf16.msra.mxu1 %v1445_v7 }
 0x48e   :  { %1364 = vmatprep.subr.bf16.mxu1 %v1401_v0 }
 0x491   :  { %1366 = vmatpush3.bf16.msra.mxu1 %v1457_v10 }
 0x492   :  { %1367 = vmatprep.subr.bf16.mxu1 %v1401_v0 }
 0x495   :  { %1369 = vmatpush3.bf16.msra.mxu1 %v1469_v13 }
 0x496   :  { %1370 = vmatprep.subr.bf16.mxu1 %v1401_v0 }
 0x499   :  { %1372 = vmatpush3.bf16.msra.mxu1 %v1481_v16 }
 0x49a   :  { %1373 = vmatprep.subr.bf16.mxu1 %v1401_v0 }
 0x49d   :  { %1375 = vmatpush3.bf16.msra.mxu1 %v1493_v19 }
 0x49e   :  { %1376 = vmatprep.subr.bf16.mxu1 %v1401_v0 }
 0x4a1   :  { %1378 = vmatpush3.bf16.msra.mxu1 %v1505_v22 }
 0x4a2   :  { %1379 = vmatprep.subr.bf16.mxu1 %v1401_v0 }
 0x4a5   :  { %1381 = vmatpush3.bf16.msra.mxu1 %v1517_v25 }
 0x55b   :  { %v563_v53 = vpop.f32.mrb[4].mxu1 }
 0x55c   :  { %v567_v54 = vadd.f32 %v768_v52, %v563_v53  ;;  %v1119_v55 = vpop.f32.mrb[5].mxu1 }
 0x55e   :  { %1395 = vtanh.f32 %v567_v54 }
 0x568   :  { %v1396_v56 = vpop.eup %1395 }
 0x569   :  { %769 = vst [vmem:[%s1686_s3 + $0x28] sm:$0xff] %v1396_v56  ;;  %1153 = vmatmul.mubr.f32.vlgmr.msra.gmra.mrb[6].mxu0 %v1396_v56 }
 0x63c   :  { %v655_v58 = vpop.f32.mrb[6].mxu0 }
 0x63d   :  { %v659_v59 = vadd.f32 %v770_v57, %v655_v58  ;;  %v1154_v60 = vpop.f32.mrb[7].mxu0 }
 0x63f   :  { %1397 = vtanh.f32 %v659_v59 }
 0x649   :  { %v1398_v61 = vpop.eup %1397 }
 0x64a   :  { %771 = vst [vmem:[%s1686_s3 + $0x30] sm:$0xff] %v1398_v61  ;;  %1188 = vmatmul.mubr.f32.vlgmr.msra.gmra.mrb[6].mxu1 %v1398_v61 }
 0x71d   :  { %v747_v63 = vpop.f32.mrb[6].mxu1 }
 0x71e   :  { %v751_v0 = vadd.f32 %v772_v62, %v747_v63  ;;  %v1189_v1 = vpop.f32.mrb[7].mxu1 }
 0x720   :  { %1399 = vtanh.f32 %v751_v0 }
 0x72a   :  { %v1400_v2 = vpop.eup %1399 }
 0x72b   :  { %773 = vst [vmem:[%s1686_s3 + $0x38] sm:$0xff] %v1400_v2 }

// kernel: _forward_sequence_impl.1
= control target key start
LH: loop header
LB: loop body
LE: loop exit
PB: predicated region body
PF: predicated region fallthrough
CT: control target
= control target key end

     0   :  { %v1401_v0 = vmov 0.0|0.0   ;;  %vm1402_vm0 = vmmov 0   ;;  %v1403_v4 = vmov 0.0   ;;  %s1683_s2 = inlined_call_operand.vmem [shape: f32[128,128], index: 2, kind: input, shape index: {}]   ;;  %s1684_s1 = inlined_call_operand.vmem [shape: f32[8,128], index: 1, kind: input, shape index: {}]   ;;  %s1685_s0 = inlined_call_operand.vmem [shape: f32[8,8,128], index: 0, kind: input, shape index: {}]   ;;  %s1686_s3 = inlined_call_operand.vmem [shape: f32[8,8,128], index: 3, kind: output, shape index: {}]  }
   0x1   :  { %1190 = vmatprep.subr.bf16.mxu0 %v1401_v0  ;;  %v22_v1 = vld [vmem:[%s1683_s2] sm:$0xff]  ;;  %v23_v2 = vld [vmem:[%s1683_s2 + $0x8] sm:$0xff]  ;;  %v24_v3 = vld [vmem:[%s1683_s2 + $0x10] sm:$0xff]  ;;  %942 = vmatprep.mubr.msk.f32.mxu0 %vm1402_vm0, %v1403_v4 }
   0x2   :  { %v1436_v5 = vpack.c.bf16 %v23_v2, %v22_v1  ;;  %v25_v6 = vld [vmem:[%s1683_s2 + $0x18] sm:$0xff]  ;;  %1214 = vmatprep.subr.bf16.mxu1 %v1401_v0  ;;  %977 = vmatprep.mubr.msk.f32.mxu1 %vm1402_vm0, %v1403_v4  ;;  %v26_v8 = vld [vmem:[%s1683_s2 + $0x20] sm:$0xff]  ;;  %v27_v9 = vld [vmem:[%s1683_s2 + $0x28] sm:$0xff] }
   0x3   :  { %v1445_v7 = vpack.c.bf16 %v25_v6, %v24_v3  ;;  %v1457_v10 = vpack.c.bf16 %v27_v9, %v26_v8  ;;  %v28_v11 = vld [vmem:[%s1683_s2 + $0x30] sm:$0xff]  ;;  %v29_v12 = vld [vmem:[%s1683_s2 + $0x38] sm:$0xff]  ;;  %v30_v14 = vld [vmem:[%s1683_s2 + $0x40] sm:$0xff] }
   0x4   :  { %1192 = vmatpush3.bf16.msra.mxu0 %v1436_v5  ;;  %1216 = vmatpush3.bf16.msra.mxu1 %v1436_v5  ;;  %v1469_v13 = vpack.c.bf16 %v29_v12, %v28_v11  ;;  %v31_v15 = vld [vmem:[%s1683_s2 + $0x48] sm:$0xff]  ;;  %v32_v17 = vld [vmem:[%s1683_s2 + $0x50] sm:$0xff]  ;;  %v33_v18 = vld [vmem:[%s1683_s2 + $0x58] sm:$0xff] }
   0x5   :  { %1193 = vmatprep.subr.bf16.mxu0 %v1401_v0  ;;  %1217 = vmatprep.subr.bf16.mxu1 %v1401_v0  ;;  %v1481_v16 = vpack.c.bf16 %v31_v15, %v30_v14  ;;  %v1493_v19 = vpack.c.bf16 %v33_v18, %v32_v17  ;;  %v34_v20 = vld [vmem:[%s1683_s2 + $0x60] sm:$0xff]  ;;  %v35_v21 = vld [vmem:[%s1683_s2 + $0x68] sm:$0xff]  ;;  %v36_v23 = vld [vmem:[%s1683_s2 + $0x70] sm:$0xff] }
   0x6   :  { %v1505_v22 = vpack.c.bf16 %v35_v21, %v34_v20  ;;  %v37_v24 = vld [vmem:[%s1683_s2 + $0x78] sm:$0xff]  ;;  %v18_v26 = vld [vmem:[%s1684_s1] sm:$0xff]  ;;  %v760_v32 = vld [vmem:[%s1685_s0 + $0x8] sm:$0xff] }
   0x7   :  { %v1517_v25 = vpack.c.bf16 %v37_v24, %v36_v23  ;;  %v21_v27 = vld [vmem:[%s1685_s0] sm:$0xff]  ;;  %v762_v37 = vld [vmem:[%s1685_s0 + $0x10] sm:$0xff]  ;;  %v764_v42 = vld [vmem:[%s1685_s0 + $0x18] sm:$0xff] }
   0x8   :  { %1195 = vmatpush3.bf16.msra.mxu0 %v1445_v7  ;;  %1219 = vmatpush3.bf16.msra.mxu1 %v1445_v7  ;;  %v766_v47 = vld [vmem:[%s1685_s0 + $0x20] sm:$0xff]  ;;  %v768_v52 = vld [vmem:[%s1685_s0 + $0x28] sm:$0xff]  ;;  %v770_v57 = vld [vmem:[%s1685_s0 + $0x30] sm:$0xff] }
   0x9   :  { %1196 = vmatprep.subr.bf16.mxu0 %v1401_v0  ;;  %1220 = vmatprep.subr.bf16.mxu1 %v1401_v0  ;;  %v772_v62 = vld [vmem:[%s1685_s0 + $0x38] sm:$0xff] }
   0xc   :  { %1198 = vmatpush3.bf16.msra.mxu0 %v1457_v10  ;;  %1222 = vmatpush3.bf16.msra.mxu1 %v1457_v10 }
   0xd   :  { %1199 = vmatprep.subr.bf16.mxu0 %v1401_v0  ;;  %1223 = vmatprep.subr.bf16.mxu1 %v1401_v0 }
  0x10   :  { %1201 = vmatpush3.bf16.msra.mxu0 %v1469_v13  ;;  %1225 = vmatpush3.bf16.msra.mxu1 %v1469_v13 }
  0x11   :  { %1202 = vmatprep.subr.bf16.mxu0 %v1401_v0  ;;  %1226 = vmatprep.subr.bf16.mxu1 %v1401_v0 }
  0x14   :  { %1204 = vmatpush3.bf16.msra.mxu0 %v1481_v16  ;;  %1228 = vmatpush3.bf16.msra.mxu1 %v1481_v16 }
  0x15   :  { %1205 = vmatprep.subr.bf16.mxu0 %v1401_v0  ;;  %1229 = vmatprep.subr.bf16.mxu1 %v1401_v0 }
  0x18   :  { %1207 = vmatpush3.bf16.msra.mxu0 %v1493_v19  ;;  %1231 = vmatpush3.bf16.msra.mxu1 %v1493_v19 }
  0x19   :  { %1208 = vmatprep.subr.bf16.mxu0 %v1401_v0  ;;  %1232 = vmatprep.subr.bf16.mxu1 %v1401_v0 }
  0x1c   :  { %1210 = vmatpush3.bf16.msra.mxu0 %v1505_v22  ;;  %1234 = vmatpush3.bf16.msra.mxu1 %v1505_v22 }
  0x1d   :  { %1211 = vmatprep.subr.bf16.mxu0 %v1401_v0  ;;  %1235 = vmatprep.subr.bf16.mxu1 %v1401_v0 }
  0x20   :  { %1213 = vmatpush3.bf16.msra.mxu0 %v1517_v25  ;;  %1237 = vmatpush3.bf16.msra.mxu1 %v1517_v25 }
  0x21   :  { %1238 = vmatprep.subr.bf16.mxu0 %v1401_v0  ;;  %1262 = vmatprep.subr.bf16.mxu1 %v1401_v0 }
  0x23   :  { %943 = vmatmul.mubr.f32.vlgmr.msra.gmra.mrb[0].mxu0 %v18_v26 }
  0x24   :  { %1240 = vmatpush3.bf16.msra.mxu0 %v1436_v5  ;;  %1012 = vmatprep.mubr.msk.f32.mxu0 %vm1402_vm0, %v1403_v4 }
  0x25   :  { %1241 = vmatprep.subr.bf16.mxu0 %v1401_v0 }
  0x28   :  { %1243 = vmatpush3.bf16.msra.mxu0 %v1445_v7 }
  0x29   :  { %1244 = vmatprep.subr.bf16.mxu0 %v1401_v0 }
  0x2c   :  { %1246 = vmatpush3.bf16.msra.mxu0 %v1457_v10 }
  0x2d   :  { %1247 = vmatprep.subr.bf16.mxu0 %v1401_v0 }
  0x30   :  { %1249 = vmatpush3.bf16.msra.mxu0 %v1469_v13 }
  0x31   :  { %1250 = vmatprep.subr.bf16.mxu0 %v1401_v0 }
  0x34   :  { %1252 = vmatpush3.bf16.msra.mxu0 %v1481_v16 }
  0x35   :  { %1253 = vmatprep.subr.bf16.mxu0 %v1401_v0 }
  0x38   :  { %1255 = vmatpush3.bf16.msra.mxu0 %v1493_v19 }
  0x39   :  { %1256 = vmatprep.subr.bf16.mxu0 %v1401_v0 }
  0x3c   :  { %1258 = vmatpush3.bf16.msra.mxu0 %v1505_v22 }
  0x3d   :  { %1259 = vmatprep.subr.bf16.mxu0 %v1401_v0 }
  0x40   :  { %1261 = vmatpush3.bf16.msra.mxu0 %v1517_v25 }
  0x41   :  { %1286 = vmatprep.subr.bf16.mxu0 %v1401_v0 }
  0xf6   :  { %v104_v28 = vpop.f32.mrb[0].mxu0 }
  0xf7   :  { %v108_v29 = vadd.f32 %v104_v28, %v21_v27  ;;  %v944_v30 = vpop.f32.mrb[1].mxu0 }
  0xf9   :  { %1385 = vtanh.f32 %v108_v29 }
 0x103   :  { %v1386_v31 = vpop.eup %1385 }
 0x104   :  { %110 = vst [vmem:[%s1686_s3] sm:$0xff] %v1386_v31  ;;  %978 = vmatmul.mubr.f32.vlgmr.msra.gmra.mrb[0].mxu1 %v1386_v31 }
 0x105   :  { %1264 = vmatpush3.bf16.msra.mxu1 %v1436_v5  ;;  %1047 = vmatprep.mubr.msk.f32.mxu1 %vm1402_vm0, %v1403_v4 }
 0x106   :  { %1265 = vmatprep.subr.bf16.mxu1 %v1401_v0 }
 0x109   :  { %1267 = vmatpush3.bf16.msra.mxu1 %v1445_v7 }
 0x10a   :  { %1268 = vmatprep.subr.bf16.mxu1 %v1401_v0 }
 0x10d   :  { %1270 = vmatpush3.bf16.msra.mxu1 %v1457_v10 }
 0x10e   :  { %1271 = vmatprep.subr.bf16.mxu1 %v1401_v0 }
 0x111   :  { %1273 = vmatpush3.bf16.msra.mxu1 %v1469_v13 }
 0x112   :  { %1274 = vmatprep.subr.bf16.mxu1 %v1401_v0 }
 0x115   :  { %1276 = vmatpush3.bf16.msra.mxu1 %v1481_v16 }
 0x116   :  { %1277 = vmatprep.subr.bf16.mxu1 %v1401_v0 }
 0x119   :  { %1279 = vmatpush3.bf16.msra.mxu1 %v1493_v19 }
 0x11a   :  { %1280 = vmatprep.subr.bf16.mxu1 %v1401_v0 }
 0x11d   :  { %1282 = vmatpush3.bf16.msra.mxu1 %v1505_v22 }
 0x11e   :  { %1283 = vmatprep.subr.bf16.mxu1 %v1401_v0 }
 0x121   :  { %1285 = vmatpush3.bf16.msra.mxu1 %v1517_v25 }
 0x122   :  { %1310 = vmatprep.subr.bf16.mxu1 %v1401_v0 }
 0x1d7   :  { %v195_v33 = vpop.f32.mrb[0].mxu1 }
 0x1d8   :  { %v199_v34 = vadd.f32 %v760_v32, %v195_v33  ;;  %v979_v35 = vpop.f32.mrb[1].mxu1 }
 0x1da   :  { %1387 = vtanh.f32 %v199_v34 }
 0x1e4   :  { %v1388_v36 = vpop.eup %1387 }
 0x1e5   :  { %761 = vst [vmem:[%s1686_s3 + $0x8] sm:$0xff] %v1388_v36  ;;  %1013 = vmatmul.mubr.f32.vlgmr.msra.gmra.mrb[2].mxu0 %v1388_v36 }
 0x1e6   :  { %1288 = vmatpush3.bf16.msra.mxu0 %v1436_v5  ;;  %1082 = vmatprep.mubr.msk.f32.mxu0 %vm1402_vm0, %v1403_v4 }
 0x1e7   :  { %1289 = vmatprep.subr.bf16.mxu0 %v1401_v0 }
 0x1ea   :  { %1291 = vmatpush3.bf16.msra.mxu0 %v1445_v7 }
 0x1eb   :  { %1292 = vmatprep.subr.bf16.mxu0 %v1401_v0 }
 0x1ee   :  { %1294 = vmatpush3.bf16.msra.mxu0 %v1457_v10 }
 0x1ef   :  { %1295 = vmatprep.subr.bf16.mxu0 %v1401_v0 }
 0x1f2   :  { %1297 = vmatpush3.bf16.msra.mxu0 %v1469_v13 }
 0x1f3   :  { %1298 = vmatprep.subr.bf16.mxu0 %v1401_v0 }
 0x1f6   :  { %1300 = vmatpush3.bf16.msra.mxu0 %v1481_v16 }
 0x1f7   :  { %1301 = vmatprep.subr.bf16.mxu0 %v1401_v0 }
 0x1fa   :  { %1303 = vmatpush3.bf16.msra.mxu0 %v1493_v19 }
 0x1fb   :  { %1304 = vmatprep.subr.bf16.mxu0 %v1401_v0 }
 0x1fe   :  { %1306 = vmatpush3.bf16.msra.mxu0 %v1505_v22 }
 0x1ff   :  { %1307 = vmatprep.subr.bf16.mxu0 %v1401_v0 }
 0x202   :  { %1309 = vmatpush3.bf16.msra.mxu0 %v1517_v25 }
 0x203   :  { %1334 = vmatprep.subr.bf16.mxu0 %v1401_v0 }
 0x2b8   :  { %v287_v38 = vpop.f32.mrb[2].mxu0 }
 0x2b9   :  { %v291_v39 = vadd.f32 %v762_v37, %v287_v38  ;;  %v1014_v40 = vpop.f32.mrb[3].mxu0 }
 0x2bb   :  { %1389 = vtanh.f32 %v291_v39 }
 0x2c5   :  { %v1390_v41 = vpop.eup %1389 }
 0x2c6   :  { %763 = vst [vmem:[%s1686_s3 + $0x10] sm:$0xff] %v1390_v41  ;;  %1048 = vmatmul.mubr.f32.vlgmr.msra.gmra.mrb[2].mxu1 %v1390_v41 }
 0x2c7   :  { %1312 = vmatpush3.bf16.msra.mxu1 %v1436_v5  ;;  %1117 = vmatprep.mubr.msk.f32.mxu1 %vm1402_vm0, %v1403_v4 }
 0x2c8   :  { %1313 = vmatprep.subr.bf16.mxu1 %v1401_v0 }
 0x2cb   :  { %1315 = vmatpush3.bf16.msra.mxu1 %v1445_v7 }
 0x2cc   :  { %1316 = vmatprep.subr.bf16.mxu1 %v1401_v0 }
 0x2cf   :  { %1318 = vmatpush3.bf16.msra.mxu1 %v1457_v10 }
 0x2d0   :  { %1319 = vmatprep.subr.bf16.mxu1 %v1401_v0 }
 0x2d3   :  { %1321 = vmatpush3.bf16.msra.mxu1 %v1469_v13 }
 0x2d4   :  { %1322 = vmatprep.subr.bf16.mxu1 %v1401_v0 }
 0x2d7   :  { %1324 = vmatpush3.bf16.msra.mxu1 %v1481_v16 }
 0x2d8   :  { %1325 = vmatprep.subr.bf16.mxu1 %v1401_v0 }
 0x2db   :  { %1327 = vmatpush3.bf16.msra.mxu1 %v1493_v19 }
 0x2dc   :  { %1328 = vmatprep.subr.bf16.mxu1 %v1401_v0 }
 0x2df   :  { %1330 = vmatpush3.bf16.msra.mxu1 %v1505_v22 }
 0x2e0   :  { %1331 = vmatprep.subr.bf16.mxu1 %v1401_v0 }
 0x2e3   :  { %1333 = vmatpush3.bf16.msra.mxu1 %v1517_v25 }
 0x2e4   :  { %1358 = vmatprep.subr.bf16.mxu1 %v1401_v0 }
 0x399   :  { %v379_v43 = vpop.f32.mrb[2].mxu1 }
 0x39a   :  { %v383_v44 = vadd.f32 %v764_v42, %v379_v43  ;;  %v1049_v45 = vpop.f32.mrb[3].mxu1 }
 0x39c   :  { %1391 = vtanh.f32 %v383_v44 }
 0x3a6   :  { %v1392_v46 = vpop.eup %1391 }
 0x3a7   :  { %765 = vst [vmem:[%s1686_s3 + $0x18] sm:$0xff] %v1392_v46  ;;  %1083 = vmatmul.mubr.f32.vlgmr.msra.gmra.mrb[4].mxu0 %v1392_v46 }
 0x3a8   :  { %1336 = vmatpush3.bf16.msra.mxu0 %v1436_v5  ;;  %1152 = vmatprep.mubr.msk.f32.mxu0 %vm1402_vm0, %v1403_v4 }
 0x3a9   :  { %1337 = vmatprep.subr.bf16.mxu0 %v1401_v0 }
 0x3ac   :  { %1339 = vmatpush3.bf16.msra.mxu0 %v1445_v7 }
 0x3ad   :  { %1340 = vmatprep.subr.bf16.mxu0 %v1401_v0 }
 0x3b0   :  { %1342 = vmatpush3.bf16.msra.mxu0 %v1457_v10 }
 0x3b1   :  { %1343 = vmatprep.subr.bf16.mxu0 %v1401_v0 }
 0x3b4   :  { %1345 = vmatpush3.bf16.msra.mxu0 %v1469_v13 }
 0x3b5   :  { %1346 = vmatprep.subr.bf16.mxu0 %v1401_v0 }
 0x3b8   :  { %1348 = vmatpush3.bf16.msra.mxu0 %v1481_v16 }
 0x3b9   :  { %1349 = vmatprep.subr.bf16.mxu0 %v1401_v0 }
 0x3bc   :  { %1351 = vmatpush3.bf16.msra.mxu0 %v1493_v19 }
 0x3bd   :  { %1352 = vmatprep.subr.bf16.mxu0 %v1401_v0 }
 0x3c0   :  { %1354 = vmatpush3.bf16.msra.mxu0 %v1505_v22 }
 0x3c1   :  { %1355 = vmatprep.subr.bf16.mxu0 %v1401_v0 }
 0x3c4   :  { %1357 = vmatpush3.bf16.msra.mxu0 %v1517_v25 }
 0x47a   :  { %v471_v48 = vpop.f32.mrb[4].mxu0 }
 0x47b   :  { %v475_v49 = vadd.f32 %v766_v47, %v471_v48  ;;  %v1084_v50 = vpop.f32.mrb[5].mxu0 }
 0x47d   :  { %1393 = vtanh.f32 %v475_v49 }
 0x487   :  { %v1394_v51 = vpop.eup %1393 }
 0x488   :  { %767 = vst [vmem:[%s1686_s3 + $0x20] sm:$0xff] %v1394_v51  ;;  %1118 = vmatmul.mubr.f32.vlgmr.msra.gmra.mrb[4].mxu1 %v1394_v51 }
 0x489   :  { %1360 = vmatpush3.bf16.msra.mxu1 %v1436_v5  ;;  %1187 = vmatprep.mubr.msk.f32.mxu1 %vm1402_vm0, %v1403_v4 }
 0x48a   :  { %1361 = vmatprep.subr.bf16.mxu1 %v1401_v0 }
 0x48d   :  { %1363 = vmatpush3.bf16.msra.mxu1 %v1445_v7 }
 0x48e   :  { %1364 = vmatprep.subr.bf16.mxu1 %v1401_v0 }
 0x491   :  { %1366 = vmatpush3.bf16.msra.mxu1 %v1457_v10 }
 0x492   :  { %1367 = vmatprep.subr.bf16.mxu1 %v1401_v0 }
 0x495   :  { %1369 = vmatpush3.bf16.msra.mxu1 %v1469_v13 }
 0x496   :  { %1370 = vmatprep.subr.bf16.mxu1 %v1401_v0 }
 0x499   :  { %1372 = vmatpush3.bf16.msra.mxu1 %v1481_v16 }
 0x49a   :  { %1373 = vmatprep.subr.bf16.mxu1 %v1401_v0 }
 0x49d   :  { %1375 = vmatpush3.bf16.msra.mxu1 %v1493_v19 }
 0x49e   :  { %1376 = vmatprep.subr.bf16.mxu1 %v1401_v0 }
 0x4a1   :  { %1378 = vmatpush3.bf16.msra.mxu1 %v1505_v22 }
 0x4a2   :  { %1379 = vmatprep.subr.bf16.mxu1 %v1401_v0 }
 0x4a5   :  { %1381 = vmatpush3.bf16.msra.mxu1 %v1517_v25 }
 0x55b   :  { %v563_v53 = vpop.f32.mrb[4].mxu1 }
 0x55c   :  { %v567_v54 = vadd.f32 %v768_v52, %v563_v53  ;;  %v1119_v55 = vpop.f32.mrb[5].mxu1 }
 0x55e   :  { %1395 = vtanh.f32 %v567_v54 }
 0x568   :  { %v1396_v56 = vpop.eup %1395 }
 0x569   :  { %769 = vst [vmem:[%s1686_s3 + $0x28] sm:$0xff] %v1396_v56  ;;  %1153 = vmatmul.mubr.f32.vlgmr.msra.gmra.mrb[6].mxu0 %v1396_v56 }
 0x63c   :  { %v655_v58 = vpop.f32.mrb[6].mxu0 }
 0x63d   :  { %v659_v59 = vadd.f32 %v770_v57, %v655_v58  ;;  %v1154_v60 = vpop.f32.mrb[7].mxu0 }
 0x63f   :  { %1397 = vtanh.f32 %v659_v59 }
 0x649   :  { %v1398_v61 = vpop.eup %1397 }
 0x64a   :  { %771 = vst [vmem:[%s1686_s3 + $0x30] sm:$0xff] %v1398_v61  ;;  %1188 = vmatmul.mubr.f32.vlgmr.msra.gmra.mrb[6].mxu1 %v1398_v61 }
 0x71d   :  { %v747_v63 = vpop.f32.mrb[6].mxu1 }
 0x71e   :  { %v751_v0 = vadd.f32 %v772_v62, %v747_v63  ;;  %v1189_v1 = vpop.f32.mrb[7].mxu1 }
 0x720   :  { %1399 = vtanh.f32 %v751_v0 }
 0x72a   :  { %v1400_v2 = vpop.eup %1399 }
 0x72b   :  { %773 = vst [vmem:[%s1686_s3 + $0x38] sm:$0xff] %v1400_v2 }

</bundles_post_ra>
